<compile_context>
chip_gen: v7x
topology: tpu7x:2x2x1
jax: 0.10.0
libtpu: 0.0.40
codegen_flags: <defaults>
</compile_context>

<pallas_src>
import numpy as np
import jax
import jax.numpy as jnp
from jax.experimental import pallas as pl
from jax.experimental.pallas import tpu as pltpu


def _round_up(x, m):
    return (x + m - 1) // m * m


def _resident_spec(a):
    """Full-array block with a fixed block index -> fetched once, VMEM-resident."""
    nd = a.ndim
    return pl.BlockSpec(a.shape, lambda i, _nd=nd: (0,) * _nd)


# ----------------------------------------------------------------------------
# Kernels
# ----------------------------------------------------------------------------
def _conv_layer(y, g_ref, w_ref, b_ref, compute_dtype):
    """One conv layer on a (M_in, Cin) activation `y`.

    g_ref : (kk, M_out, M_in)  0/1 row-gather matrix per kernel offset (exact)
    w_ref : (kk*Cin, Cout)     im2col-ordered weights (offset-major rows)
    b_ref : (1, Cout)          f32 bias
    """
    kk = g_ref.shape[0]
    # kk independent gathers (no serial accumulation chain) ...
    pieces = [jnp.dot(g_ref[r], y, preferred_element_type=jnp.float32)
              for r in range(kk)]
    # ... assembled into the full im2col operand (M_out, kk*Cin) ...
    cols = jnp.concatenate(pieces, axis=1).astype(compute_dtype)
    # ... consumed by ONE wide K-stacked GEMM.
    acc = jnp.dot(cols, w_ref[...], preferred_element_type=jnp.float32)
    return jnp.maximum(acc + b_ref[...], 0.0).astype(compute_dtype)


def _image_encoder_kernel(cols1_ref, w1_ref, b1_ref,
                          g2_ref, w2_ref, b2_ref,
                          g3_ref, w3_ref, b3_ref,
                          wl_ref, bl_ref, o_ref):
    """Whole conv trunk + flatten + linear for ONE image (grid step = image)."""
    cdt = w1_ref.dtype

    # conv1: im2col done wrapper-side -> one GEMM + bias + ReLU.
    y = jnp.dot(cols1_ref[...], w1_ref[...], preferred_element_type=jnp.float32)
    y = jnp.maximum(y + b1_ref[...], 0.0).astype(cdt)            # (M1, 32)

    # conv2 / conv3: gather -> concat -> one wide GEMM each.
    y = _conv_layer(y, g2_ref, w2_ref, b2_ref, cdt)              # (M2, 64)
    y = _conv_layer(y, g3_ref, w3_ref, b3_ref, cdt)              # (M3, 64)

    # CHW flatten (wl rows pre-permuted to (spatial q, channel c) order) + linear.
    m3 = y.shape[0]
    if m3 == 1:
        flat = y.astype(cdt)
    else:
        flat = jnp.concatenate(
            [y[q:q + 1, :].astype(jnp.float32) for q in range(m3)],
            axis=1).astype(cdt)                                  # (1, M3*64)
    out = jnp.dot(flat, wl_ref[...], preferred_element_type=jnp.float32)
    o_ref[...] = (out + bl_ref[...]).astype(o_ref.dtype)         # (1, latent_pad)


def _mlp_kernel(x_ref, w1_ref, b1_ref, w2_ref, b2_ref, o_ref):
    """Vector-obs branch: Linear + ReLU + Linear fused (lane-dense padded out)."""
    h = jnp.dot(x_ref[...], w1_ref[...], preferred_element_type=jnp.float32)
    h = jnp.maximum(h + b1_ref[...], 0.0).astype(w2_ref.dtype)
    out = jnp.dot(h, w2_ref[...], preferred_element_type=jnp.float32) + b2_ref[...]
    o_ref[...] = out.astype(o_ref.dtype)


# ----------------------------------------------------------------------------
# Wrapper-side, one-time data prep
# ----------------------------------------------------------------------------
def _im2col_nchw(x, k, s):
    """(N, C, H, W) -> (N, OH*OW, C*K*K); column order (c, ki*k+kj)."""
    n, c, h, w = x.shape
    oh = (h - k) // s + 1
    ow = (w - k) // s + 1
    cols = []
    for ki in range(k):
        for kj in range(k):
            cols.append(x[:, :, ki:ki + s * oh:s, kj:kj + s * ow:s])  # (N,C,OH,OW)
    p = jnp.stack(cols, axis=2)              # (N, C, K*K, OH, OW)
    p = p.transpose(0, 3, 4, 1, 2)           # (N, OH, OW, C, K*K)
    return p.reshape(n, oh * ow, c * k * k)


def _gather_matrices(ih, iw, oh, ow, k, s, dtype):
    """Batch-independent 0/1 matrices: G[r] @ rows(in) gathers, per output
    position (i,j), the input row (i*s+ki, j*s+kj) for offset r = ki*k+kj."""
    g = np.zeros((k * k, oh * ow, ih * iw), np.float32)
    for i in range(oh):
        for j in range(ow):
            po = i * ow + j
            for ki in range(k):
                for kj in range(k):
                    g[ki * k + kj, po, (i * s + ki) * iw + (j * s + kj)] = 1.0
    return jnp.asarray(g, dtype)


def _stack_conv_weight(w, dtype):
    """torch (Cout, Cin, K, K) -> (K*K*Cin, Cout), rows ordered (r=ki*K+kj, cin)."""
    cout, cin, k, _ = w.shape
    return jnp.transpose(w, (2, 3, 1, 0)).reshape(k * k * cin, cout).astype(dtype)


def _linear_from_chw(wl, bl, c_last, p_spatial, latent_pad, dtype):
    """Reorder CHW-flat Linear rows to our (spatial q, channel c) flatten order
    and zero-pad the output dim to `latent_pad` (lane-dense store)."""
    latent = wl.shape[1]
    wlr = wl.reshape(c_last, p_spatial, latent).transpose(1, 0, 2)
    wlr = wlr.reshape(p_spatial * c_last, latent)
    wlp = jnp.zeros((p_spatial * c_last, latent_pad), jnp.float32)
    wlp = wlp.at[:, :latent].set(wlr).astype(dtype)
    blp = jnp.zeros((1, latent_pad), jnp.float32).at[0, :latent].set(bl)
    return wlp, blp


# ----------------------------------------------------------------------------
# Encoder factories
# ----------------------------------------------------------------------------
def make_image_encoder(params, obs_shape, batch, compute_dtype=jnp.bfloat16):
    c, h, w = obs_shape

    def co(sz, k, s):
        return (sz - k) // s + 1

    oh1, ow1 = co(h, 8, 4), co(w, 8, 4)
    oh2, ow2 = co(oh1, 4, 2), co(ow1, 4, 2)
    oh3, ow3 = co(oh2, 3, 1), co(ow2, 3, 1)
    m1, m2, m3 = oh1 * ow1, oh2 * ow2, oh3 * ow3
    k1 = c * 64
    latent = params["wl"].shape[1]
    latent_pad = _round_up(latent, 128)

    # One-time GEMM-ready parameter layouts + batch-independent gather matrices.
    w1m = params["w1"].reshape(32, k1).T.astype(compute_dtype)      # (c*64, 32)
    b1 = params["b1"].reshape(1, 32).astype(jnp.float32)
    w2s = _stack_conv_weight(params["w2"], compute_dtype)           # (16*32, 64)
    b2 = params["b2"].reshape(1, 64).astype(jnp.float32)
    w3s = _stack_conv_weight(params["w3"], compute_dtype)           # (9*64, 64)
    b3 = params["b3"].reshape(1, 64).astype(jnp.float32)
    wlp, blp = _linear_from_chw(params["wl"], params["bl"], 64, m3,
                                latent_pad, compute_dtype)
    g2 = _gather_matrices(oh1, ow1, oh2, ow2, 4, 2, compute_dtype)  # (16, m2, m1)
    g3 = _gather_matrices(oh2, ow2, oh3, ow3, 3, 1, compute_dtype)  # (9,  m3, m2)

    consts = (w1m, b1, g2, w2s, b2, g3, w3s, b3, wlp, blp)

    in_specs = ([pl.BlockSpec((None, m1, k1), lambda b: (b, 0, 0))]
                + [_resident_spec(a) for a in consts])
    out_spec = pl.BlockSpec((None, 1, latent_pad), lambda b: (b, 0, 0))

    # Cost estimate (2 * MACs) so XLA schedules around the custom call.
    macs = (m1 * k1 * 32
            + 16 * m2 * m1 * 32 + m2 * (16 * 32) * 64
            + 9 * m3 * m2 * 64 + m3 * (9 * 64) * 64
            + (m3 * 64) * latent_pad)
    itemsize = jnp.dtype(compute_dtype).itemsize
    const_bytes = sum(int(a.size) * a.dtype.itemsize for a in consts)
    cost = pl.CostEstimate(
        flops=2 * batch * macs, transcendentals=0,
        bytes_accessed=int(batch * m1 * k1 * itemsize + const_bytes
                           + batch * latent_pad * 4))

    # Explicit VMEM budget: double-buffered per-image blocks + resident consts,
    # 4x headroom, floored at 16 MiB and capped below v7x's 64 MiB physical.
    vmem_need = 2 * (m1 * k1 * itemsize + latent_pad * 4) + const_bytes
    vmem_limit = int(min(max(4 * vmem_need, 16 << 20), 64 << 20))

    call = pl.pallas_call(
        _image_encoder_kernel,
        out_shape=jax.ShapeDtypeStruct((batch, 1, latent_pad), jnp.float32),
        grid=(batch,),
        in_specs=in_specs,
        out_specs=out_spec,
        compiler_params=pltpu.CompilerParams(
            dimension_semantics=("parallel",),
            vmem_limit_bytes=vmem_limit),
        cost_estimate=cost,
    )

    def forward(obs):
        cols1 = _im2col_nchw(obs, 8, 4).astype(compute_dtype)  # XLA-fused, one-time
        out = call(cols1, *consts)
        return out.reshape(batch, latent_pad)[:, :latent]

    return jax.jit(forward)


def make_mlp_encoder(params, batch, compute_dtype=jnp.bfloat16):
    obs_dim, hidden = params["w1"].shape
    latent = params["w2"].shape[1]
    latent_pad = _round_up(latent, 128)

    w1 = params["w1"].astype(compute_dtype)
    b1 = params["b1"].reshape(1, hidden).astype(jnp.float32)
    w2 = jnp.zeros((hidden, latent_pad), jnp.float32)
    w2 = w2.at[:, :latent].set(params["w2"]).astype(compute_dtype)
    b2 = jnp.zeros((1, latent_pad), jnp.float32).at[0, :latent].set(params["b2"])
    consts = (w1, b1, w2, b2)

    # Single block at small batch (launch-bound regime); 128-row "parallel"
    # tiles once the batch is big enough to matter.
    tm = batch if batch <= 256 else 128
    grid_m = pl.cdiv(batch, tm)

    itemsize = jnp.dtype(compute_dtype).itemsize
    cost = pl.CostEstimate(
        flops=2 * batch * (obs_dim * hidden + hidden * latent_pad),
        transcendentals=0,
        bytes_accessed=int(batch * obs_dim * itemsize
                           + sum(int(a.size) * a.dtype.itemsize for a in consts)
                           + batch * latent_pad * 4))

    call = pl.pallas_call(
        _mlp_kernel,
        out_shape=jax.ShapeDtypeStruct((batch, latent_pad), jnp.float32),
        grid=(grid_m,),
        in_specs=[pl.BlockSpec((tm, obs_dim), lambda i: (i, 0))]
                 + [_resident_spec(a) for a in consts],
        out_specs=pl.BlockSpec((tm, latent_pad), lambda i: (i, 0)),
        compiler_params=pltpu.CompilerParams(
            dimension_semantics=("parallel",),
            vmem_limit_bytes=32 * 1024 * 1024),
        cost_estimate=cost,
    )

    def forward(x):
        return call(x.astype(compute_dtype), *consts)[:, :latent]

    return jax.jit(forward)


# ----------------------------------------------------------------------------
# Deterministic parameter init (shapes per Encoder.__init__)
# ----------------------------------------------------------------------------
def init_image_params(key, obs_shape, latent_dim):
    c, h, w = obs_shape

    def co(sz, k, s):
        return (sz - k) // s + 1

    h3 = co(co(co(h, 8, 4), 4, 2), 3, 1)
    w3 = co(co(co(w, 8, 4), 4, 2), 3, 1)
    n_flatten = 64 * h3 * w3

    ks = jax.random.split(key, 4)

    def winit(k, shape, fan_in):
        return jax.random.normal(k, shape, jnp.float32) / jnp.sqrt(float(fan_in))

    params = {
        "w1": winit(ks[0], (32, c, 8, 8), c * 8 * 8),
        "b1": 0.01 * jnp.ones((32,), jnp.float32),
        "w2": winit(ks[1], (64, 32, 4, 4), 32 * 4 * 4),
        "b2": 0.01 * jnp.ones((64,), jnp.float32),
        "w3": winit(ks[2], (64, 64, 3, 3), 64 * 3 * 3),
        "b3": 0.01 * jnp.ones((64,), jnp.float32),
        "wl": winit(ks[3], (n_flatten, latent_dim), n_flatten),
        "bl": 0.01 * jnp.ones((latent_dim,), jnp.float32),
    }
    return params, n_flatten


def init_mlp_params(key, obs_dim, latent_dim):
    ks = jax.random.split(key, 2)

    def winit(k, shape, fan_in):
        return jax.random.normal(k, shape, jnp.float32) / jnp.sqrt(float(fan_in))

    return {
        "w1": winit(ks[0], (obs_dim, 256), obs_dim),
        "b1": 0.01 * jnp.ones((256,), jnp.float32),
        "w2": winit(ks[1], (256, latent_dim), 256),
        "b2": 0.01 * jnp.ones((latent_dim,), jnp.float32),
    }


# ----------------------------------------------------------------------------
# Pure-JAX references
# ----------------------------------------------------------------------------
def ref_image_forward(obs, params):
    x = obs
    for wname, bname, s in (("w1", "b1", 4), ("w2", "b2", 2), ("w3", "b3", 1)):
        x = jax.lax.conv_general_dilated(
            x, params[wname], window_strides=(s, s), padding="VALID",
            dimension_numbers=("NCHW", "OIHW", "NCHW"))
        x = jax.nn.relu(x + params[bname][None, :, None, None])
    x = x.reshape(x.shape[0], -1)
    return x @ params["wl"] + params["bl"]


def ref_mlp_forward(x, params):
    h = jax.nn.relu(x @ params["w1"] + params["b1"])
    return h @ params["w2"] + params["b2"]


if __name__ == "__main__":
    key = jax.random.PRNGKey(0)
    k_img, k_obs, k_mlp, k_vec = jax.random.split(key, 4)

    # ---------------- image branch ----------------
    batch = 2
    obs_shape = (4, 44, 44)   # small, but conv3 output is 2x2 so the >1-spatial
                              # flatten path is actually exercised.
    latent_dim = 32

    img_params, n_flatten = init_image_params(k_img, obs_shape, latent_dim)
    obs = jax.random.normal(k_obs, (batch,) + obs_shape, jnp.float32)

    img_fwd = make_image_encoder(img_params, obs_shape, batch)
    out = jax.block_until_ready(img_fwd(obs))
    assert out.shape == (batch, latent_dim), out.shape

    ref = jax.block_until_ready(ref_image_forward(obs, img_params))
    err = float(jnp.max(jnp.abs(out - ref)))
    # bf16 matmul operands (f32 accumulation) -> looser tolerance than pure f32.
    assert jnp.allclose(out, ref, rtol=5e-2, atol=5e-2), f"image err={err}"
    assert float(jnp.mean(jnp.abs(out - ref))) < 1.5e-2, f"image mean err"

    # ---------------- vector (MLP) branch ----------------
    vec_dim, vec_latent = 8, 16
    mlp_params = init_mlp_params(k_mlp, vec_dim, vec_latent)
    xvec = jax.random.normal(k_vec, (batch, vec_dim), jnp.float32)

    mlp_fwd = make_mlp_encoder(mlp_params, batch)
    out2 = jax.block_until_ready(mlp_fwd(xvec))
    assert out2.shape == (batch, vec_latent), out2.shape

    ref2 = jax.block_until_ready(ref_mlp_forward(xvec, mlp_params))
    err2 = float(jnp.max(jnp.abs(out2 - ref2)))
    assert jnp.allclose(out2, ref2, rtol=2e-2, atol=2e-2), f"mlp err={err2}"

    print("KERNEL_OK")
</pallas_src>

<mosaic_0001>
module attributes {stable_mosaic.version = 11 : i64} {
  func.func @_image_encoder_kernel(%arg0: i32, %arg1: memref<1x100x256xbf16, #tpu.memory_space<vmem>>, %arg2: memref<256x32xbf16, #tpu.memory_space<vmem>>, %arg3: memref<1x32xf32, #tpu.memory_space<vmem>>, %arg4: memref<16x16x100xbf16, #tpu.memory_space<vmem>>, %arg5: memref<512x64xbf16, #tpu.memory_space<vmem>>, %arg6: memref<1x64xf32, #tpu.memory_space<vmem>>, %arg7: memref<9x4x16xbf16, #tpu.memory_space<vmem>>, %arg8: memref<576x64xbf16, #tpu.memory_space<vmem>>, %arg9: memref<1x64xf32, #tpu.memory_space<vmem>>, %arg10: memref<256x128xbf16, #tpu.memory_space<vmem>>, %arg11: memref<1x128xf32, #tpu.memory_space<vmem>>, %arg12: memref<1x1x128xf32, #tpu.memory_space<vmem>>) attributes {dimension_semantics = [#tpu.dimension_semantics<parallel>], iteration_bounds = array<i64: 2>, scalar_prefetch = 0 : i64, scratch_operands = 0 : i64, tpu.core_type = #tpu.core_type<tc>, window_params = [{transform_indices = @transform_0, window_bounds = array<i64: 1, 100, 256>}, {pipeline_mode = #tpu.pipeline_mode<synchronous>, transform_indices = @transform_1, window_bounds = array<i64: 256, 32>}, {pipeline_mode = #tpu.pipeline_mode<synchronous>, transform_indices = @transform_2, window_bounds = array<i64: 1, 32>}, {pipeline_mode = #tpu.pipeline_mode<synchronous>, transform_indices = @transform_3, window_bounds = array<i64: 16, 16, 100>}, {pipeline_mode = #tpu.pipeline_mode<synchronous>, transform_indices = @transform_4, window_bounds = array<i64: 512, 64>}, {pipeline_mode = #tpu.pipeline_mode<synchronous>, transform_indices = @transform_5, window_bounds = array<i64: 1, 64>}, {pipeline_mode = #tpu.pipeline_mode<synchronous>, transform_indices = @transform_6, window_bounds = array<i64: 9, 4, 16>}, {pipeline_mode = #tpu.pipeline_mode<synchronous>, transform_indices = @transform_7, window_bounds = array<i64: 576, 64>}, {pipeline_mode = #tpu.pipeline_mode<synchronous>, transform_indices = @transform_8, window_bounds = array<i64: 1, 64>}, {pipeline_mode = #tpu.pipeline_mode<synchronous>, transform_indices = @transform_9, window_bounds = array<i64: 256, 128>}, {pipeline_mode = #tpu.pipeline_mode<synchronous>, transform_indices = @transform_10, window_bounds = array<i64: 1, 128>}, {transform_indices = @transform_11, window_bounds = array<i64: 1, 1, 128>}]} {
    %c0 = arith.constant 0 : index
    %c0_0 = arith.constant 0 : index
    %c0_1 = arith.constant 0 : index
    %0 = vector.load %arg1[%c0, %c0_0, %c0_1] : memref<1x100x256xbf16, #tpu.memory_space<vmem>>, vector<1x100x256xbf16>
    %1 = vector.shape_cast %0 : vector<1x100x256xbf16> to vector<100x256xbf16>
    %c0_2 = arith.constant 0 : index
    %c0_3 = arith.constant 0 : index
    %2 = vector.load %arg2[%c0_2, %c0_3] : memref<256x32xbf16, #tpu.memory_space<vmem>>, vector<256x32xbf16>
    %cst = arith.constant dense<0.000000e+00> : vector<100x32xf32>
    %3 = tpu.matmul %1, %2, %cst {dimension_numbers = #tpu.dot_dimension_numbers<[1], [0], [0], [1], [0, 0, 1, 1], [], []>} : vector<100x256xbf16>, vector<256x32xbf16>, vector<100x32xf32> -> vector<100x32xf32>
    %c0_4 = arith.constant 0 : index
    %c0_5 = arith.constant 0 : index
    %4 = vector.load %arg3[%c0_4, %c0_5] : memref<1x32xf32, #tpu.memory_space<vmem>>, vector<1x32xf32>
    %5 = vector.broadcast %4 : vector<1x32xf32> to vector<100x32xf32>
    %6 = arith.addf %3, %5 : vector<100x32xf32>
    %cst_6 = arith.constant 0.000000e+00 : f32
    %7 = vector.broadcast %cst_6 : f32 to vector<100x32xf32>
    %8 = arith.maximumf %6, %7 : vector<100x32xf32>
    %9 = arith.truncf %8 : vector<100x32xf32> to vector<100x32xbf16>
    %c0_7 = arith.constant 0 : index
    %c0_8 = arith.constant 0 : index
    %c0_9 = arith.constant 0 : index
    %10 = vector.load %arg4[%c0_7, %c0_8, %c0_9] : memref<16x16x100xbf16, #tpu.memory_space<vmem>>, vector<1x16x100xbf16>
    %11 = vector.shape_cast %10 : vector<1x16x100xbf16> to vector<16x100xbf16>
    %cst_10 = arith.constant dense<0.000000e+00> : vector<16x32xf32>
    %12 = tpu.matmul %11, %9, %cst_10 {dimension_numbers = #tpu.dot_dimension_numbers<[1], [0], [0], [1], [0, 0, 1, 1], [], []>} : vector<16x100xbf16>, vector<100x32xbf16>, vector<16x32xf32> -> vector<16x32xf32>
    %c1 = arith.constant 1 : index
    %c0_11 = arith.constant 0 : index
    %c0_12 = arith.constant 0 : index
    %13 = vector.load %arg4[%c1, %c0_11, %c0_12] : memref<16x16x100xbf16, #tpu.memory_space<vmem>>, vector<1x16x100xbf16>
    %14 = vector.shape_cast %13 : vector<1x16x100xbf16> to vector<16x100xbf16>
    %cst_13 = arith.constant dense<0.000000e+00> : vector<16x32xf32>
    %15 = tpu.matmul %14, %9, %cst_13 {dimension_numbers = #tpu.dot_dimension_numbers<[1], [0], [0], [1], [0, 0, 1, 1], [], []>} : vector<16x100xbf16>, vector<100x32xbf16>, vector<16x32xf32> -> vector<16x32xf32>
    %c2 = arith.constant 2 : index
    %c0_14 = arith.constant 0 : index
    %c0_15 = arith.constant 0 : index
    %16 = vector.load %arg4[%c2, %c0_14, %c0_15] : memref<16x16x100xbf16, #tpu.memory_space<vmem>>, vector<1x16x100xbf16>
    %17 = vector.shape_cast %16 : vector<1x16x100xbf16> to vector<16x100xbf16>
    %cst_16 = arith.constant dense<0.000000e+00> : vector<16x32xf32>
    %18 = tpu.matmul %17, %9, %cst_16 {dimension_numbers = #tpu.dot_dimension_numbers<[1], [0], [0], [1], [0, 0, 1, 1], [], []>} : vector<16x100xbf16>, vector<100x32xbf16>, vector<16x32xf32> -> vector<16x32xf32>
    %c3 = arith.constant 3 : index
    %c0_17 = arith.constant 0 : index
    %c0_18 = arith.constant 0 : index
    %19 = vector.load %arg4[%c3, %c0_17, %c0_18] : memref<16x16x100xbf16, #tpu.memory_space<vmem>>, vector<1x16x100xbf16>
    %20 = vector.shape_cast %19 : vector<1x16x100xbf16> to vector<16x100xbf16>
    %cst_19 = arith.constant dense<0.000000e+00> : vector<16x32xf32>
    %21 = tpu.matmul %20, %9, %cst_19 {dimension_numbers = #tpu.dot_dimension_numbers<[1], [0], [0], [1], [0, 0, 1, 1], [], []>} : vector<16x100xbf16>, vector<100x32xbf16>, vector<16x32xf32> -> vector<16x32xf32>
    %c4 = arith.constant 4 : index
    %c0_20 = arith.constant 0 : index
    %c0_21 = arith.constant 0 : index
    %22 = vector.load %arg4[%c4, %c0_20, %c0_21] : memref<16x16x100xbf16, #tpu.memory_space<vmem>>, vector<1x16x100xbf16>
    %23 = vector.shape_cast %22 : vector<1x16x100xbf16> to vector<16x100xbf16>
    %cst_22 = arith.constant dense<0.000000e+00> : vector<16x32xf32>
    %24 = tpu.matmul %23, %9, %cst_22 {dimension_numbers = #tpu.dot_dimension_numbers<[1], [0], [0], [1], [0, 0, 1, 1], [], []>} : vector<16x100xbf16>, vector<100x32xbf16>, vector<16x32xf32> -> vector<16x32xf32>
    %c5 = arith.constant 5 : index
    %c0_23 = arith.constant 0 : index
    %c0_24 = arith.constant 0 : index
    %25 = vector.load %arg4[%c5, %c0_23, %c0_24] : memref<16x16x100xbf16, #tpu.memory_space<vmem>>, vector<1x16x100xbf16>
    %26 = vector.shape_cast %25 : vector<1x16x100xbf16> to vector<16x100xbf16>
    %cst_25 = arith.constant dense<0.000000e+00> : vector<16x32xf32>
    %27 = tpu.matmul %26, %9, %cst_25 {dimension_numbers = #tpu.dot_dimension_numbers<[1], [0], [0], [1], [0, 0, 1, 1], [], []>} : vector<16x100xbf16>, vector<100x32xbf16>, vector<16x32xf32> -> vector<16x32xf32>
    %c6 = arith.constant 6 : index
    %c0_26 = arith.constant 0 : index
    %c0_27 = arith.constant 0 : index
    %28 = vector.load %arg4[%c6, %c0_26, %c0_27] : memref<16x16x100xbf16, #tpu.memory_space<vmem>>, vector<1x16x100xbf16>
    %29 = vector.shape_cast %28 : vector<1x16x100xbf16> to vector<16x100xbf16>
    %cst_28 = arith.constant dense<0.000000e+00> : vector<16x32xf32>
    %30 = tpu.matmul %29, %9, %cst_28 {dimension_numbers = #tpu.dot_dimension_numbers<[1], [0], [0], [1], [0, 0, 1, 1], [], []>} : vector<16x100xbf16>, vector<100x32xbf16>, vector<16x32xf32> -> vector<16x32xf32>
    %c7 = arith.constant 7 : index
    %c0_29 = arith.constant 0 : index
    %c0_30 = arith.constant 0 : index
    %31 = vector.load %arg4[%c7, %c0_29, %c0_30] : memref<16x16x100xbf16, #tpu.memory_space<vmem>>, vector<1x16x100xbf16>
    %32 = vector.shape_cast %31 : vector<1x16x100xbf16> to vector<16x100xbf16>
    %cst_31 = arith.constant dense<0.000000e+00> : vector<16x32xf32>
    %33 = tpu.matmul %32, %9, %cst_31 {dimension_numbers = #tpu.dot_dimension_numbers<[1], [0], [0], [1], [0, 0, 1, 1], [], []>} : vector<16x100xbf16>, vector<100x32xbf16>, vector<16x32xf32> -> vector<16x32xf32>
    %c8 = arith.constant 8 : index
    %c0_32 = arith.constant 0 : index
    %c0_33 = arith.constant 0 : index
    %34 = vector.load %arg4[%c8, %c0_32, %c0_33] : memref<16x16x100xbf16, #tpu.memory_space<vmem>>, vector<1x16x100xbf16>
    %35 = vector.shape_cast %34 : vector<1x16x100xbf16> to vector<16x100xbf16>
    %cst_34 = arith.constant dense<0.000000e+00> : vector<16x32xf32>
    %36 = tpu.matmul %35, %9, %cst_34 {dimension_numbers = #tpu.dot_dimension_numbers<[1], [0], [0], [1], [0, 0, 1, 1], [], []>} : vector<16x100xbf16>, vector<100x32xbf16>, vector<16x32xf32> -> vector<16x32xf32>
    %c9 = arith.constant 9 : index
    %c0_35 = arith.constant 0 : index
    %c0_36 = arith.constant 0 : index
    %37 = vector.load %arg4[%c9, %c0_35, %c0_36] : memref<16x16x100xbf16, #tpu.memory_space<vmem>>, vector<1x16x100xbf16>
    %38 = vector.shape_cast %37 : vector<1x16x100xbf16> to vector<16x100xbf16>
    %cst_37 = arith.constant dense<0.000000e+00> : vector<16x32xf32>
    %39 = tpu.matmul %38, %9, %cst_37 {dimension_numbers = #tpu.dot_dimension_numbers<[1], [0], [0], [1], [0, 0, 1, 1], [], []>} : vector<16x100xbf16>, vector<100x32xbf16>, vector<16x32xf32> -> vector<16x32xf32>
    %c10 = arith.constant 10 : index
    %c0_38 = arith.constant 0 : index
    %c0_39 = arith.constant 0 : index
    %40 = vector.load %arg4[%c10, %c0_38, %c0_39] : memref<16x16x100xbf16, #tpu.memory_space<vmem>>, vector<1x16x100xbf16>
    %41 = vector.shape_cast %40 : vector<1x16x100xbf16> to vector<16x100xbf16>
    %cst_40 = arith.constant dense<0.000000e+00> : vector<16x32xf32>
    %42 = tpu.matmul %41, %9, %cst_40 {dimension_numbers = #tpu.dot_dimension_numbers<[1], [0], [0], [1], [0, 0, 1, 1], [], []>} : vector<16x100xbf16>, vector<100x32xbf16>, vector<16x32xf32> -> vector<16x32xf32>
    %c11 = arith.constant 11 : index
    %c0_41 = arith.constant 0 : index
    %c0_42 = arith.constant 0 : index
    %43 = vector.load %arg4[%c11, %c0_41, %c0_42] : memref<16x16x100xbf16, #tpu.memory_space<vmem>>, vector<1x16x100xbf16>
    %44 = vector.shape_cast %43 : vector<1x16x100xbf16> to vector<16x100xbf16>
    %cst_43 = arith.constant dense<0.000000e+00> : vector<16x32xf32>
    %45 = tpu.matmul %44, %9, %cst_43 {dimension_numbers = #tpu.dot_dimension_numbers<[1], [0], [0], [1], [0, 0, 1, 1], [], []>} : vector<16x100xbf16>, vector<100x32xbf16>, vector<16x32xf32> -> vector<16x32xf32>
    %c12 = arith.constant 12 : index
    %c0_44 = arith.constant 0 : index
    %c0_45 = arith.constant 0 : index
    %46 = vector.load %arg4[%c12, %c0_44, %c0_45] : memref<16x16x100xbf16, #tpu.memory_space<vmem>>, vector<1x16x100xbf16>
    %47 = vector.shape_cast %46 : vector<1x16x100xbf16> to vector<16x100xbf16>
    %cst_46 = arith.constant dense<0.000000e+00> : vector<16x32xf32>
    %48 = tpu.matmul %47, %9, %cst_46 {dimension_numbers = #tpu.dot_dimension_numbers<[1], [0], [0], [1], [0, 0, 1, 1], [], []>} : vector<16x100xbf16>, vector<100x32xbf16>, vector<16x32xf32> -> vector<16x32xf32>
    %c13 = arith.constant 13 : index
    %c0_47 = arith.constant 0 : index
    %c0_48 = arith.constant 0 : index
    %49 = vector.load %arg4[%c13, %c0_47, %c0_48] : memref<16x16x100xbf16, #tpu.memory_space<vmem>>, vector<1x16x100xbf16>
    %50 = vector.shape_cast %49 : vector<1x16x100xbf16> to vector<16x100xbf16>
    %cst_49 = arith.constant dense<0.000000e+00> : vector<16x32xf32>
    %51 = tpu.matmul %50, %9, %cst_49 {dimension_numbers = #tpu.dot_dimension_numbers<[1], [0], [0], [1], [0, 0, 1, 1], [], []>} : vector<16x100xbf16>, vector<100x32xbf16>, vector<16x32xf32> -> vector<16x32xf32>
    %c14 = arith.constant 14 : index
    %c0_50 = arith.constant 0 : index
    %c0_51 = arith.constant 0 : index
    %52 = vector.load %arg4[%c14, %c0_50, %c0_51] : memref<16x16x100xbf16, #tpu.memory_space<vmem>>, vector<1x16x100xbf16>
    %53 = vector.shape_cast %52 : vector<1x16x100xbf16> to vector<16x100xbf16>
    %cst_52 = arith.constant dense<0.000000e+00> : vector<16x32xf32>
    %54 = tpu.matmul %53, %9, %cst_52 {dimension_numbers = #tpu.dot_dimension_numbers<[1], [0], [0], [1], [0, 0, 1, 1], [], []>} : vector<16x100xbf16>, vector<100x32xbf16>, vector<16x32xf32> -> vector<16x32xf32>
    %c15 = arith.constant 15 : index
    %c0_53 = arith.constant 0 : index
    %c0_54 = arith.constant 0 : index
    %55 = vector.load %arg4[%c15, %c0_53, %c0_54] : memref<16x16x100xbf16, #tpu.memory_space<vmem>>, vector<1x16x100xbf16>
    %56 = vector.shape_cast %55 : vector<1x16x100xbf16> to vector<16x100xbf16>
    %cst_55 = arith.constant dense<0.000000e+00> : vector<16x32xf32>
    %57 = tpu.matmul %56, %9, %cst_55 {dimension_numbers = #tpu.dot_dimension_numbers<[1], [0], [0], [1], [0, 0, 1, 1], [], []>} : vector<16x100xbf16>, vector<100x32xbf16>, vector<16x32xf32> -> vector<16x32xf32>
    %58 = tpu.concatenate %12, %15, %18, %21, %24, %27, %30, %33, %36, %39, %42, %45, %48, %51, %54, %57 in 1 : vector<16x32xf32>, vector<16x32xf32>, vector<16x32xf32>, vector<16x32xf32>, vector<16x32xf32>, vector<16x32xf32>, vector<16x32xf32>, vector<16x32xf32>, vector<16x32xf32>, vector<16x32xf32>, vector<16x32xf32>, vector<16x32xf32>, vector<16x32xf32>, vector<16x32xf32>, vector<16x32xf32>, vector<16x32xf32> -> vector<16x512xf32>
    %59 = arith.truncf %58 : vector<16x512xf32> to vector<16x512xbf16>
    %c0_56 = arith.constant 0 : index
    %c0_57 = arith.constant 0 : index
    %60 = vector.load %arg5[%c0_56, %c0_57] : memref<512x64xbf16, #tpu.memory_space<vmem>>, vector<512x64xbf16>
    %cst_58 = arith.constant dense<0.000000e+00> : vector<16x64xf32>
    %61 = tpu.matmul %59, %60, %cst_58 {dimension_numbers = #tpu.dot_dimension_numbers<[1], [0], [0], [1], [0, 0, 1, 1], [], []>} : vector<16x512xbf16>, vector<512x64xbf16>, vector<16x64xf32> -> vector<16x64xf32>
    %c0_59 = arith.constant 0 : index
    %c0_60 = arith.constant 0 : index
    %62 = vector.load %arg6[%c0_59, %c0_60] : memref<1x64xf32, #tpu.memory_space<vmem>>, vector<1x64xf32>
    %63 = vector.broadcast %62 : vector<1x64xf32> to vector<16x64xf32>
    %64 = arith.addf %61, %63 : vector<16x64xf32>
    %cst_61 = arith.constant 0.000000e+00 : f32
    %65 = vector.broadcast %cst_61 : f32 to vector<16x64xf32>
    %66 = arith.maximumf %64, %65 : vector<16x64xf32>
    %67 = arith.truncf %66 : vector<16x64xf32> to vector<16x64xbf16>
    %c0_62 = arith.constant 0 : index
    %c0_63 = arith.constant 0 : index
    %c0_64 = arith.constant 0 : index
    %68 = vector.load %arg7[%c0_62, %c0_63, %c0_64] : memref<9x4x16xbf16, #tpu.memory_space<vmem>>, vector<1x4x16xbf16>
    %69 = vector.shape_cast %68 : vector<1x4x16xbf16> to vector<4x16xbf16>
    %cst_65 = arith.constant dense<0.000000e+00> : vector<4x64xf32>
    %70 = tpu.matmul %69, %67, %cst_65 {dimension_numbers = #tpu.dot_dimension_numbers<[1], [0], [0], [1], [0, 0, 1, 1], [], []>} : vector<4x16xbf16>, vector<16x64xbf16>, vector<4x64xf32> -> vector<4x64xf32>
    %c1_66 = arith.constant 1 : index
    %c0_67 = arith.constant 0 : index
    %c0_68 = arith.constant 0 : index
    %71 = vector.load %arg7[%c1_66, %c0_67, %c0_68] : memref<9x4x16xbf16, #tpu.memory_space<vmem>>, vector<1x4x16xbf16>
    %72 = vector.shape_cast %71 : vector<1x4x16xbf16> to vector<4x16xbf16>
    %cst_69 = arith.constant dense<0.000000e+00> : vector<4x64xf32>
    %73 = tpu.matmul %72, %67, %cst_69 {dimension_numbers = #tpu.dot_dimension_numbers<[1], [0], [0], [1], [0, 0, 1, 1], [], []>} : vector<4x16xbf16>, vector<16x64xbf16>, vector<4x64xf32> -> vector<4x64xf32>
    %c2_70 = arith.constant 2 : index
    %c0_71 = arith.constant 0 : index
    %c0_72 = arith.constant 0 : index
    %74 = vector.load %arg7[%c2_70, %c0_71, %c0_72] : memref<9x4x16xbf16, #tpu.memory_space<vmem>>, vector<1x4x16xbf16>
    %75 = vector.shape_cast %74 : vector<1x4x16xbf16> to vector<4x16xbf16>
    %cst_73 = arith.constant dense<0.000000e+00> : vector<4x64xf32>
    %76 = tpu.matmul %75, %67, %cst_73 {dimension_numbers = #tpu.dot_dimension_numbers<[1], [0], [0], [1], [0, 0, 1, 1], [], []>} : vector<4x16xbf16>, vector<16x64xbf16>, vector<4x64xf32> -> vector<4x64xf32>
    %c3_74 = arith.constant 3 : index
    %c0_75 = arith.constant 0 : index
    %c0_76 = arith.constant 0 : index
    %77 = vector.load %arg7[%c3_74, %c0_75, %c0_76] : memref<9x4x16xbf16, #tpu.memory_space<vmem>>, vector<1x4x16xbf16>
    %78 = vector.shape_cast %77 : vector<1x4x16xbf16> to vector<4x16xbf16>
    %cst_77 = arith.constant dense<0.000000e+00> : vector<4x64xf32>
    %79 = tpu.matmul %78, %67, %cst_77 {dimension_numbers = #tpu.dot_dimension_numbers<[1], [0], [0], [1], [0, 0, 1, 1], [], []>} : vector<4x16xbf16>, vector<16x64xbf16>, vector<4x64xf32> -> vector<4x64xf32>
    %c4_78 = arith.constant 4 : index
    %c0_79 = arith.constant 0 : index
    %c0_80 = arith.constant 0 : index
    %80 = vector.load %arg7[%c4_78, %c0_79, %c0_80] : memref<9x4x16xbf16, #tpu.memory_space<vmem>>, vector<1x4x16xbf16>
    %81 = vector.shape_cast %80 : vector<1x4x16xbf16> to vector<4x16xbf16>
    %cst_81 = arith.constant dense<0.000000e+00> : vector<4x64xf32>
    %82 = tpu.matmul %81, %67, %cst_81 {dimension_numbers = #tpu.dot_dimension_numbers<[1], [0], [0], [1], [0, 0, 1, 1], [], []>} : vector<4x16xbf16>, vector<16x64xbf16>, vector<4x64xf32> -> vector<4x64xf32>
    %c5_82 = arith.constant 5 : index
    %c0_83 = arith.constant 0 : index
    %c0_84 = arith.constant 0 : index
    %83 = vector.load %arg7[%c5_82, %c0_83, %c0_84] : memref<9x4x16xbf16, #tpu.memory_space<vmem>>, vector<1x4x16xbf16>
    %84 = vector.shape_cast %83 : vector<1x4x16xbf16> to vector<4x16xbf16>
    %cst_85 = arith.constant dense<0.000000e+00> : vector<4x64xf32>
    %85 = tpu.matmul %84, %67, %cst_85 {dimension_numbers = #tpu.dot_dimension_numbers<[1], [0], [0], [1], [0, 0, 1, 1], [], []>} : vector<4x16xbf16>, vector<16x64xbf16>, vector<4x64xf32> -> vector<4x64xf32>
    %c6_86 = arith.constant 6 : index
    %c0_87 = arith.constant 0 : index
    %c0_88 = arith.constant 0 : index
    %86 = vector.load %arg7[%c6_86, %c0_87, %c0_88] : memref<9x4x16xbf16, #tpu.memory_space<vmem>>, vector<1x4x16xbf16>
    %87 = vector.shape_cast %86 : vector<1x4x16xbf16> to vector<4x16xbf16>
    %cst_89 = arith.constant dense<0.000000e+00> : vector<4x64xf32>
    %88 = tpu.matmul %87, %67, %cst_89 {dimension_numbers = #tpu.dot_dimension_numbers<[1], [0], [0], [1], [0, 0, 1, 1], [], []>} : vector<4x16xbf16>, vector<16x64xbf16>, vector<4x64xf32> -> vector<4x64xf32>
    %c7_90 = arith.constant 7 : index
    %c0_91 = arith.constant 0 : index
    %c0_92 = arith.constant 0 : index
    %89 = vector.load %arg7[%c7_90, %c0_91, %c0_92] : memref<9x4x16xbf16, #tpu.memory_space<vmem>>, vector<1x4x16xbf16>
    %90 = vector.shape_cast %89 : vector<1x4x16xbf16> to vector<4x16xbf16>
    %cst_93 = arith.constant dense<0.000000e+00> : vector<4x64xf32>
    %91 = tpu.matmul %90, %67, %cst_93 {dimension_numbers = #tpu.dot_dimension_numbers<[1], [0], [0], [1], [0, 0, 1, 1], [], []>} : vector<4x16xbf16>, vector<16x64xbf16>, vector<4x64xf32> -> vector<4x64xf32>
    %c8_94 = arith.constant 8 : index
    %c0_95 = arith.constant 0 : index
    %c0_96 = arith.constant 0 : index
    %92 = vector.load %arg7[%c8_94, %c0_95, %c0_96] : memref<9x4x16xbf16, #tpu.memory_space<vmem>>, vector<1x4x16xbf16>
    %93 = vector.shape_cast %92 : vector<1x4x16xbf16> to vector<4x16xbf16>
    %cst_97 = arith.constant dense<0.000000e+00> : vector<4x64xf32>
    %94 = tpu.matmul %93, %67, %cst_97 {dimension_numbers = #tpu.dot_dimension_numbers<[1], [0], [0], [1], [0, 0, 1, 1], [], []>} : vector<4x16xbf16>, vector<16x64xbf16>, vector<4x64xf32> -> vector<4x64xf32>
    %95 = tpu.concatenate %70, %73, %76, %79, %82, %85, %88, %91, %94 in 1 : vector<4x64xf32>, vector<4x64xf32>, vector<4x64xf32>, vector<4x64xf32>, vector<4x64xf32>, vector<4x64xf32>, vector<4x64xf32>, vector<4x64xf32>, vector<4x64xf32> -> vector<4x576xf32>
    %96 = arith.truncf %95 : vector<4x576xf32> to vector<4x576xbf16>
    %c0_98 = arith.constant 0 : index
    %c0_99 = arith.constant 0 : index
    %97 = vector.load %arg8[%c0_98, %c0_99] : memref<576x64xbf16, #tpu.memory_space<vmem>>, vector<576x64xbf16>
    %cst_100 = arith.constant dense<0.000000e+00> : vector<4x64xf32>
    %98 = tpu.matmul %96, %97, %cst_100 {dimension_numbers = #tpu.dot_dimension_numbers<[1], [0], [0], [1], [0, 0, 1, 1], [], []>} : vector<4x576xbf16>, vector<576x64xbf16>, vector<4x64xf32> -> vector<4x64xf32>
    %c0_101 = arith.constant 0 : index
    %c0_102 = arith.constant 0 : index
    %99 = vector.load %arg9[%c0_101, %c0_102] : memref<1x64xf32, #tpu.memory_space<vmem>>, vector<1x64xf32>
    %100 = vector.broadcast %99 : vector<1x64xf32> to vector<4x64xf32>
    %101 = arith.addf %98, %100 : vector<4x64xf32>
    %cst_103 = arith.constant 0.000000e+00 : f32
    %102 = vector.broadcast %cst_103 : f32 to vector<4x64xf32>
    %103 = arith.maximumf %101, %102 : vector<4x64xf32>
    %104 = arith.truncf %103 : vector<4x64xf32> to vector<4x64xbf16>
    %105 = vector.extract_strided_slice %104 {offsets = [0, 0], sizes = [1, 64], strides = [1, 1]} : vector<4x64xbf16> to vector<1x64xbf16>
    %106 = arith.extf %105 : vector<1x64xbf16> to vector<1x64xf32>
    %107 = vector.extract_strided_slice %104 {offsets = [1, 0], sizes = [1, 64], strides = [1, 1]} : vector<4x64xbf16> to vector<1x64xbf16>
    %108 = arith.extf %107 : vector<1x64xbf16> to vector<1x64xf32>
    %109 = vector.extract_strided_slice %104 {offsets = [2, 0], sizes = [1, 64], strides = [1, 1]} : vector<4x64xbf16> to vector<1x64xbf16>
    %110 = arith.extf %109 : vector<1x64xbf16> to vector<1x64xf32>
    %111 = vector.extract_strided_slice %104 {offsets = [3, 0], sizes = [1, 64], strides = [1, 1]} : vector<4x64xbf16> to vector<1x64xbf16>
    %112 = arith.extf %111 : vector<1x64xbf16> to vector<1x64xf32>
    %113 = tpu.concatenate %106, %108, %110, %112 in 1 : vector<1x64xf32>, vector<1x64xf32>, vector<1x64xf32>, vector<1x64xf32> -> vector<1x256xf32>
    %114 = arith.truncf %113 : vector<1x256xf32> to vector<1x256xbf16>
    %c0_104 = arith.constant 0 : index
    %c0_105 = arith.constant 0 : index
    %115 = vector.load %arg10[%c0_104, %c0_105] : memref<256x128xbf16, #tpu.memory_space<vmem>>, vector<256x128xbf16>
    %cst_106 = arith.constant dense<0.000000e+00> : vector<1x128xf32>
    %116 = tpu.matmul %114, %115, %cst_106 {dimension_numbers = #tpu.dot_dimension_numbers<[1], [0], [0], [1], [0, 0, 1, 1], [], []>} : vector<1x256xbf16>, vector<256x128xbf16>, vector<1x128xf32> -> vector<1x128xf32>
    %c0_107 = arith.constant 0 : index
    %c0_108 = arith.constant 0 : index
    %117 = vector.load %arg11[%c0_107, %c0_108] : memref<1x128xf32, #tpu.memory_space<vmem>>, vector<1x128xf32>
    %118 = arith.addf %116, %117 : vector<1x128xf32>
    %c0_109 = arith.constant 0 : index
    %c0_110 = arith.constant 0 : index
    %c0_111 = arith.constant 0 : index
    %119 = vector.load %arg12[%c0_109, %c0_110, %c0_111] : memref<1x1x128xf32, #tpu.memory_space<vmem>>, vector<1x1x128xf32>
    %120 = vector.shape_cast %119 : vector<1x1x128xf32> to vector<1x128xf32>
    %121 = vector.shape_cast %118 : vector<1x128xf32> to vector<1x1x128xf32>
    tpu.vector_store %arg12[%c0_109, %c0_110, %c0_111], %121 {strides = array<i32>} : memref<1x1x128xf32, #tpu.memory_space<vmem>>, vector<1x1x128xf32>,
    return
  }
  func.func @transform_0(%arg0: i32) -> (i32, i32, i32) {
    %c0_i32 = arith.constant 0 : i32
    %c0_i32_0 = arith.constant 0 : i32
    %c0_i32_1 = arith.constant 0 : i32
    return %arg0, %c0_i32, %c0_i32_0 : i32, i32, i32
  }
  func.func @transform_1(%arg0: i32) -> (i32, i32) {
    %c0_i32 = arith.constant 0 : i32
    %c0_i32_0 = arith.constant 0 : i32
    %c0_i32_1 = arith.constant 0 : i32
    return %c0_i32, %c0_i32_0 : i32, i32
  }
  func.func @transform_2(%arg0: i32) -> (i32, i32) {
    %c0_i32 = arith.constant 0 : i32
    %c0_i32_0 = arith.constant 0 : i32
    %c0_i32_1 = arith.constant 0 : i32
    return %c0_i32, %c0_i32_0 : i32, i32
  }
  func.func @transform_3(%arg0: i32) -> (i32, i32, i32) {
    %c0_i32 = arith.constant 0 : i32
    %c0_i32_0 = arith.constant 0 : i32
    %c0_i32_1 = arith.constant 0 : i32
    %c0_i32_2 = arith.constant 0 : i32
    return %c0_i32, %c0_i32_0, %c0_i32_1 : i32, i32, i32
  }
  func.func @transform_4(%arg0: i32) -> (i32, i32) {
    %c0_i32 = arith.constant 0 : i32
    %c0_i32_0 = arith.constant 0 : i32
    %c0_i32_1 = arith.constant 0 : i32
    return %c0_i32, %c0_i32_0 : i32, i32
  }
  func.func @transform_5(%arg0: i32) -> (i32, i32) {
    %c0_i32 = arith.constant 0 : i32
    %c0_i32_0 = arith.constant 0 : i32
    %c0_i32_1 = arith.constant 0 : i32
    return %c0_i32, %c0_i32_0 : i32, i32
  }
  func.func @transform_6(%arg0: i32) -> (i32, i32, i32) {
    %c0_i32 = arith.constant 0 : i32
    %c0_i32_0 = arith.constant 0 : i32
    %c0_i32_1 = arith.constant 0 : i32
    %c0_i32_2 = arith.constant 0 : i32
    return %c0_i32, %c0_i32_0, %c0_i32_1 : i32, i32, i32
  }
  func.func @transform_7(%arg0: i32) -> (i32, i32) {
    %c0_i32 = arith.constant 0 : i32
    %c0_i32_0 = arith.constant 0 : i32
    %c0_i32_1 = arith.constant 0 : i32
    return %c0_i32, %c0_i32_0 : i32, i32
  }
  func.func @transform_8(%arg0: i32) -> (i32, i32) {
    %c0_i32 = arith.constant 0 : i32
    %c0_i32_0 = arith.constant 0 : i32
    %c0_i32_1 = arith.constant 0 : i32
    return %c0_i32, %c0_i32_0 : i32, i32
  }
  func.func @transform_9(%arg0: i32) -> (i32, i32) {
    %c0_i32 = arith.constant 0 : i32
    %c0_i32_0 = arith.constant 0 : i32
    %c0_i32_1 = arith.constant 0 : i32
    return %c0_i32, %c0_i32_0 : i32, i32
  }
  func.func @transform_10(%arg0: i32) -> (i32, i32) {
    %c0_i32 = arith.constant 0 : i32
    %c0_i32_0 = arith.constant 0 : i32
    %c0_i32_1 = arith.constant 0 : i32
    return %c0_i32, %c0_i32_0 : i32, i32
  }
  func.func @transform_11(%arg0: i32) -> (i32, i32, i32) {
    %c0_i32 = arith.constant 0 : i32
    %c0_i32_0 = arith.constant 0 : i32
    %c0_i32_1 = arith.constant 0 : i32
    return %arg0, %c0_i32, %c0_i32_0 : i32, i32, i32
  }
}

</mosaic_0001>

<bundles_post_ra>
// kernel: forward.1
= control target key start
LH: loop header
LB: loop body
LE: loop exit
PB: predicated region body
PF: predicated region fallthrough
CT: control target
= control target key end

     0   :  { %16 = vsyncpa [#allocation3], 0  ;;  %s5318_s0 = inlined_call_operand.vmem [shape: bf16[2,100,256], index: 0, kind: input, shape index: {}]   ;;  %s5319_s1 = inlined_call_operand.vmem [shape: bf16[256,32], index: 1, kind: input, shape index: {}]   ;;  %s5320_s2 = inlined_call_operand.vmem [shape: f32[1,32], index: 2, kind: input, shape index: {}]   ;;  %s5321_s3 = inlined_call_operand.vmem [shape: bf16[16,16,100], index: 3, kind: input, shape index: {}]   ;;  %s5322_s4 = inlined_call_operand.vmem [shape: bf16[512,64], index: 4, kind: input, shape index: {}]   ;;  %s5323_s5 = inlined_call_operand.vmem [shape: f32[1,64], index: 5, kind: input, shape index: {}, may-alias: {5,8}]   ;;  %s5324_s6 = inlined_call_operand.vmem [shape: bf16[9,4,16], index: 6, kind: input, shape index: {}]   ;;  %s5325_s7 = inlined_call_operand.vmem [shape: bf16[576,64], index: 7, kind: input, shape index: {}]   ;;  %s5326_s8 = inlined_call_operand.vmem [shape: f32[1,64], index: 8, kind: input, shape index: {}, may-alias: {5,8}]   ;;  %s5327_s9 = inlined_call_operand.vmem [shape: bf16[256,128], index: 9, kind: input, shape index: {}]   ;;  %s5328_s10 = inlined_call_operand.vmem [shape: f32[1,128], index: 10, kind: input, shape index: {}]   ;;  %s5329_s11 = inlined_call_operand.hbm [shape: f32[2,1,128], index: 11, kind: output, shape index: {}]  }
   0x1   :  { %18 = vsyncpa [#allocation3 + $0x1], 0  ;;  %s4387_s17 = smov 0   ;;  %s4389_s18 = smov 0  }
   0x2   :  { %s4391_s19 = smov 0   ;;  %s4393_s20 = smov 0  }
   0x3 LB: > { %5333 = sst [smem:[#allocation5_spill]] %s4315_s19  ;;  %s4408_s21 = sadd.s32 4294967295, %s4319_s20   ;;  %s4319_s20 = sphi %s4393_s20, %s5342_s20   ;;  %s4315_s19 = sphi %s4391_s19, %s5339_s19   ;;  %s4311_s18 = sphi %s4389_s18, %s5341_s18   ;;  %s4307_s17 = sphi %s4387_s17, %s5340_s17  }
   0x4   : > { %s3123_s22 = sadd.s32 4294967294, %s4319_s20   ;;  %s4412_s23 = sadd.s32 1, %s4319_s20  }
   0x5   : > { %s267_s24 = sadd.s32 1, %s4315_s19  ;;  %s264_s25 = ssub.s32 %s4319_s20, %s4412_s23 }
   0x6   : > { %p277_p0 = scmp.ne.s32.totalorder %s4315_s19, %s4311_s18  ;;  %p265_p1 = scmp.eq.s32.totalorder %s264_s25, 0 }
   0x7   : > { %p278_p2 = scmp.eq.s32.totalorder %s4408_s21, 1  ;;  %p283_p3 = scmp.ne.s32.totalorder %s4311_s18, %s4307_s17 }
   0x8   : > { %p284_p4 = scmp.eq.s32.totalorder %s3123_s22, 1  ;;  %p3126_p7 = scmp.ge.s32.totalorder %s4319_s20, 1 }
   0x9   : > { %s4423_s26 = scalar_select %p265_p1, %s4315_s19, %s267_s24  }
   0xa   : > { %p4425_p5 = por %p278_p2, %p277_p0  ;;  %p4429_p6 = por %p284_p4, %p283_p3 }
   0xb   : > { %5334 = sst [smem:[#allocation6_spill]] %s4423_s26  ;;  %p340_p8 = scmp.lt.s32.totalorder %s4319_s20, 3 }
   0xd   : > { %p341_p9 = pnand %p3126_p7, %p340_p8 }
   0xe   : > { %v4121_v0 = vld [vmem:[%s5319_s1 + $0x40] sm:$0xff] (!%p341_p9)   ;;  %v4123_v2 = vld [vmem:[%s5319_s1 + $0x48] sm:$0xff] (!%p341_p9)   ;;  %p379_p10 = scmp.lt.s32.totalorder (!%p341_p9), %s4408_s21, 1  ;;  %v4125_v4 = vld [vmem:[%s5319_s1 + $0x50] sm:$0xff] (!%p341_p9)   ;;  %v4321_v31 = vmov (!%p341_p9), 0.0   ;;  %vm4322_vm0 = vmmov (!%p341_p9), 0  }
   0xf   : > { %344 = sbr.rel (%p341_p9) target bundleno = 2055 (0x807), region = 64  ;;  %v4122_v1 = vld [vmem:[%s5319_s1] sm:$0xff] (!%p341_p9)   ;;  %3328 = vmatprep.subr.bf16.mxu0 (!%p341_p9), %v4121_v0  ;;  %v4124_v3 = vld [vmem:[%s5319_s1 + $0x8] sm:$0xff] (!%p341_p9)   ;;  %v4126_v5 = vld [vmem:[%s5319_s1 + $0x10] sm:$0xff] (!%p341_p9)   ;;  %3647 = vmatprep.subr.bf16.mxu1 (!%p341_p9), %v4321_v31  ;;  %vm719_vm1 = vcmask (!%p341_p9), 1041408   ;;  %vm715_vm2 = vcmask (!%p341_p9), 818176  }
  0x10   : > { %3329 = vmatpush3.bf16.msra.mxu0 (!%p341_p9), %v4122_v1  ;;  %v4127_v6 = vld [vmem:[%s5319_s1 + $0x58] sm:$0xff] (!%p341_p9)   ;;  %v4129_v8 = vld [vmem:[%s5319_s1 + $0x60] sm:$0xff] (!%p341_p9)   ;;  %v4131_v10 = vld [vmem:[%s5319_s1 + $0x68] sm:$0xff] (!%p341_p9)   ;;  %3661 = vmatprep.mubr.msk.bf16.mxu1 (!%p341_p9), %vm4322_vm0, %v4321_v31  ;;  %s5331_s25 = smov (!%p341_p9), 96   ;;  %s4325_s14 = smov (!%p341_p9), 64   ;;  %vm1643_vm3 = vcmask (!%p341_p9), 523264  }
  0x11   : > { %3330 = vmatprep.subr.bf16.mxu0 (!%p341_p9), %v4123_v2  ;;  %v4128_v7 = vld [vmem:[%s5319_s1 + $0x18] sm:$0xff] (!%p341_p9)   ;;  %v4130_v9 = vld [vmem:[%s5319_s1 + $0x20] sm:$0xff] (!%p341_p9)   ;;  %v4132_v12 = vld [vmem:[%s5319_s1 + $0x28] sm:$0xff] (!%p341_p9)   ;;  %vm1640_vm4 = vcmask (!%p341_p9), 261120   ;;  %vm1646_vm5 = vcmask (!%p341_p9), 785408   ;;  %s5337_s26 = smov (!%p341_p9), 96  }
  0x12   : > { %v4133_v13 = vld [vmem:[%s5319_s1 + $0x70] sm:$0xff] (!%p341_p9)   ;;  %v4135_v15 = vld [vmem:[%s5319_s1 + $0x78] sm:$0xff] (!%p341_p9)   ;;  %v4512_v33 = vld [vmem:[%s5320_s2] ss:$0 sm:$0xff] (!%p341_p9)  ;;  %vm2020_vm6 = vcmask (!%p341_p9), 130048  }
  0x13   : > { %v4134_v14 = vld [vmem:[%s5319_s1 + $0x30] sm:$0xff] (!%p341_p9)   ;;  %v4136_v16 = vld [vmem:[%s5319_s1 + $0x38] sm:$0xff] (!%p341_p9)  }
  0x14   : > { %3331 = vmatpush3.bf16.msra.mxu0 (!%p341_p9), %v4124_v3 }
  0x15   : > { %3332 = vmatprep.subr.bf16.mxu0 (!%p341_p9), %v4125_v4 }
  0x16   : > { %s380_s29 = scalar_select %p379_p10, %s4408_s21, 1 }
  0x18   : > { %s4001_s15 = smul.u32 104, %s380_s29  ;;  %3333 = vmatpush3.bf16.msra.mxu0 %v4126_v5  ;;  %s4324_s29 = smov 32  }
  0x19   : > { %3334 = vmatprep.subr.bf16.mxu0 %v4127_v6 }
  0x1a   : > { %s4467_s30 = scalar_lea.vmem %s5318_s0, %s4001_s15 }
  0x1b   : > { %v4139_v11 = vld [vmem:[%s4467_s30 + $0x4] ss:$8 sps:$4 sm:$0xff]   ;;  %v4137_v17 = vld [vmem:[%s4467_s30] ss:$8 sps:$4 sm:$0xff]   ;;  %v4140_v18 = vld [vmem:[%s4467_s30 + $0x14] ss:$8 sps:$4 sm:$0xff]  }
  0x1c   : > { %3335 = vmatpush3.bf16.msra.mxu0 %v4128_v7  ;;  %632 = vmatprep.mubr.bf16.mxu0 %v4139_v11  ;;  %v4142_v19 = vld [vmem:[%s4467_s30 + $0x10] ss:$8 sps:$4 sm:$0xff]   ;;  %v4143_v20 = vld [vmem:[%s4467_s30 + $0x24] ss:$8 sps:$4 sm:$0xff]   ;;  %v4145_v21 = vld [vmem:[%s4467_s30 + $0x20] ss:$8 sps:$4 sm:$0xff]  }
  0x1d   : > { %3336 = vmatprep.subr.bf16.mxu0 %v4129_v8  ;;  %v4146_v22 = vld [vmem:[%s4467_s30 + $0x34] ss:$8 sps:$4 sm:$0xff]   ;;  %v4148_v23 = vld [vmem:[%s4467_s30 + $0x30] ss:$8 sps:$4 sm:$0xff]   ;;  %v4149_v24 = vld [vmem:[%s4467_s30 + $0x44] ss:$8 sps:$4 sm:$0xff]  }
  0x1e   : > { %v4151_v25 = vld [vmem:[%s4467_s30 + $0x40] ss:$8 sps:$4 sm:$0xff]   ;;  %v4152_v26 = vld [vmem:[%s4467_s30 + $0x54] ss:$8 sps:$4 sm:$0xff]   ;;  %v4154_v28 = vld [vmem:[%s4467_s30 + $0x50] ss:$8 sps:$4 sm:$0xff]  }
  0x1f   : > { %v397_v27 = vld [vmem:[%s4467_s30 + $0x60] sm:$0x33] }
  0x20   : > { %3337 = vmatpush3.bf16.msra.mxu0 %v4130_v9  ;;  %v3142_v29 = vcombine.high %v397_v27, %v397_v27  ;;  %v3141_v30 = vcombine.low %v397_v27, %v397_v27 }
  0x21   : > { %3338 = vmatprep.subr.bf16.mxu0 %v4131_v10 }
  0x24   : > { %3339 = vmatpush3.bf16.msra.mxu0 %v4132_v12 }
  0x25   : > { %3340 = vmatprep.subr.bf16.mxu0 %v4133_v13 }
  0x28   : > { %3341 = vmatpush3.bf16.msra.mxu0 %v4134_v14 }
  0x29   : > { %3342 = vmatprep.subr.bf16.mxu0 %v4135_v15 }
  0x2c   : > { %3343 = vmatpush3.bf16.msra.mxu0 %v4136_v16 }
  0x2d   : > { %3701 = vmatprep.subr.bf16.mxu0 %v4321_v31 }
  0x2f   : > { %633 = vmatmul.mubr.bf16.vlgmr.msra.gmra.mrb[0].mxu0 %v4137_v17 }
  0x30   : > { %640 = vmatprep.mubr.bf16.mxu0 %v4140_v18 }
  0x37   : > { %641 = vmatmul.mubr.bf16.gmra.mrb[4].mxu0 %v4142_v19 }
  0x38   : > { %648 = vmatprep.mubr.bf16.mxu0 %v4143_v20 }
  0x3f   : > { %649 = vmatmul.mubr.bf16.gmra.mrb[8].mxu0 %v4145_v21 }
  0x40   : > { %656 = vmatprep.mubr.bf16.mxu0 %v4146_v22 }
  0x47   : > { %657 = vmatmul.mubr.bf16.gmra.mrb[12].mxu0 %v4148_v23 }
  0x48   : > { %664 = vmatprep.mubr.bf16.mxu0 %v4149_v24 }
  0x4f   : > { %665 = vmatmul.mubr.bf16.gmra.mrb[16].mxu0 %v4151_v25 }
  0x50   : > { %672 = vmatprep.mubr.bf16.mxu0 %v4152_v26 }
  0x57   : > { %673 = vmatmul.mubr.bf16.gmra.mrb[20].mxu0 %v4154_v28 }
  0x58   : > { %680 = vmatprep.mubr.bf16.mxu0 %v3142_v29 }
  0x5f   : > { %681 = vmatmul.mubr.bf16.gmra.mrb[24].mxu0 %v3141_v30 }
  0x60   : > { %3715 = vmatprep.mubr.msk.bf16.mxu0 %vm4322_vm0, %v4321_v31 }
 0x102   : > { %v3344_v32 = vpop.f32.mrb[0].mxu0 }
 0x103   : > { %v3345_v34 = vpop.f32.mrb[1].mxu0 }
 0x104   : > { %v3346_v35 = vadd.f32 %v3345_v34, %v3344_v32  ;;  %v3347_v36 = vpop.f32.mrb[2].mxu0 }
 0x105   : > { %v3348_v37 = vpop.f32.mrb[3].mxu0 }
 0x106   : > { %v635_v38 = vadd.f32 %v3346_v35, %v4512_v33  ;;  %v3349_v39 = vadd.f32 %v3348_v37, %v3347_v36 }
 0x108   : > { %v638_v40 = vadd.f32 %v3349_v39, %v4512_v33  ;;  %v688_v41 = vmax.f32 %v635_v38, 0.0 }
 0x10a   : > { %v689_v42 = vmax.f32 %v638_v40, 0.0  ;;  %v3350_v43 = vpop.f32.mrb[4].mxu0 }
 0x10b   : > { %v3351_v44 = vpop.f32.mrb[5].mxu0 }
 0x10c   : > { %v4516_v45 = vpack.c.bf16 %v689_v42, %v688_v41  ;;  %v3352_v46 = vadd.f32 %v3351_v44, %v3350_v43  ;;  %v3353_v47 = vpop.f32.mrb[6].mxu0 }
 0x10d   : > { %v3354_v48 = vpop.f32.mrb[7].mxu0 }
 0x10e   : > { %v643_v49 = vadd.f32 %v3352_v46, %v4512_v33  ;;  %v3355_v50 = vadd.f32 %v3354_v48, %v3353_v47  ;;  %3648 = vmatpush3.bf16.msra.mxu1 %v4516_v45  ;;  %3702 = vmatpush3.bf16.msra.mxu0 %v4516_v45  ;;  %v4157_v47 = vld [vmem:[%s5321_s3] sm:$0xff]   ;;  %v4159_v48 = vld [vmem:[%s5321_s3 + $0x8] sm:$0xff]  }
 0x10f   : > { %3649 = vmatprep.subr.bf16.mxu1 %v4321_v31  ;;  %3703 = vmatprep.subr.bf16.mxu0 %v4321_v31 }
 0x110   : > { %v646_v51 = vadd.f32 %v3355_v50, %v4512_v33  ;;  %v690_v52 = vmax.f32 %v643_v49, 0.0  ;;  %v4160_v49 = vld [vmem:[%s5321_s3 + $0x28] sm:$0xff]   ;;  %v4161_v50 = vld [vmem:[%s5321_s3 + $0x10] sm:$0xff]  }
 0x112   : > { %v691_v53 = vmax.f32 %v646_v51, 0.0  ;;  %v3356_v54 = vpop.f32.mrb[8].mxu0  ;;  %v4162_v51 = vld [vmem:[%s5321_s3 + $0x38] sm:$0xff]  }
 0x113   : > { %v3357_v55 = vpop.f32.mrb[9].mxu0 }
 0x114   : > { %v4524_v56 = vpack.c.bf16 %v691_v53, %v690_v52  ;;  %v3358_v57 = vadd.f32 %v3357_v55, %v3356_v54  ;;  %v3359_v58 = vpop.f32.mrb[10].mxu0  ;;  %v4163_v52 = vld [vmem:[%s5321_s3 + $0x20] sm:$0xff]   ;;  %v4164_v53 = vld [vmem:[%s5321_s3 + $0x48] sm:$0xff]   ;;  %v4165_v54 = vld [vmem:[%s5321_s3 + $0x30] sm:$0xff]  }
 0x115   : > { %v3360_v59 = vpop.f32.mrb[11].mxu0  ;;  %v4166_v55 = vld [vmem:[%s5321_s3 + $0x58] sm:$0xff]  }
 0x116   : > { %v651_v60 = vadd.f32 %v3358_v57, %v4512_v33  ;;  %v3361_v61 = vadd.f32 %v3360_v59, %v3359_v58  ;;  %3650 = vmatpush3.bf16.msra.mxu1 %v4524_v56  ;;  %3704 = vmatpush3.bf16.msra.mxu0 %v4524_v56  ;;  %v4167_v57 = vld [vmem:[%s5321_s3 + $0x40] sm:$0xff]   ;;  %v4168_v58 = vld [vmem:[%s5321_s3 + $0x68] sm:$0xff]   ;;  %v4169_v59 = vld [vmem:[%s5321_s3 + $0x50] sm:$0xff]  }
 0x117   : > { %3651 = vmatprep.subr.bf16.mxu1 %v4321_v31  ;;  %3705 = vmatprep.subr.bf16.mxu0 %v4321_v31 }
 0x118   : > { %v654_v62 = vadd.f32 %v3361_v61, %v4512_v33  ;;  %v692_v63 = vmax.f32 %v651_v60, 0.0  ;;  %v4172_v60 = vld [vmem:[%s5321_s3 + $0x78] sm:$0xff]   ;;  %v4170_v61 = vld [vmem:[%s5321_s3 + $0x60] sm:$0xff]  }
 0x11a   : > { %v693_v0 = vmax.f32 %v654_v62, 0.0  ;;  %v3362_v1 = vpop.f32.mrb[12].mxu0 }
 0x11b   : > { %v3363_v2 = vpop.f32.mrb[13].mxu0 }
 0x11c   : > { %v4532_v3 = vpack.c.bf16 %v693_v0, %v692_v63  ;;  %v3364_v4 = vadd.f32 %v3363_v2, %v3362_v1  ;;  %v3365_v5 = vpop.f32.mrb[14].mxu0 }
 0x11d   : > { %v3366_v6 = vpop.f32.mrb[15].mxu0 }
 0x11e   : > { %v659_v7 = vadd.f32 %v3364_v4, %v4512_v33  ;;  %v3367_v8 = vadd.f32 %v3366_v6, %v3365_v5  ;;  %3652 = vmatpush3.bf16.msra.mxu1 %v4532_v3  ;;  %3706 = vmatpush3.bf16.msra.mxu0 %v4532_v3  ;;  %v4171_v5 = vld [vmem:[%s5321_s3 + $0x70] sm:$0xff]  }
 0x11f   : > { %3653 = vmatprep.subr.bf16.mxu1 %v4321_v31  ;;  %3707 = vmatprep.subr.bf16.mxu0 %v4321_v31 }
 0x120   : > { %v662_v9 = vadd.f32 %v3367_v8, %v4512_v33  ;;  %v694_v10 = vmax.f32 %v659_v7, 0.0 }
 0x122   : > { %v695_v11 = vmax.f32 %v662_v9, 0.0  ;;  %v3368_v12 = vpop.f32.mrb[16].mxu0 }
 0x123   : > { %v3369_v13 = vpop.f32.mrb[17].mxu0 }
 0x124   : > { %v4540_v14 = vpack.c.bf16 %v695_v11, %v694_v10  ;;  %v3370_v15 = vadd.f32 %v3369_v13, %v3368_v12  ;;  %v3371_v16 = vpop.f32.mrb[18].mxu0 }
 0x125   : > { %v3372_v17 = vpop.f32.mrb[19].mxu0 }
 0x126   : > { %v667_v18 = vadd.f32 %v3370_v15, %v4512_v33  ;;  %v3373_v19 = vadd.f32 %v3372_v17, %v3371_v16  ;;  %3654 = vmatpush3.bf16.msra.mxu1 %v4540_v14  ;;  %3708 = vmatpush3.bf16.msra.mxu0 %v4540_v14 }
 0x127   : > { %3655 = vmatprep.subr.bf16.mxu1 %v4321_v31  ;;  %3709 = vmatprep.subr.bf16.mxu0 %v4321_v31 }
 0x128   : > { %v670_v20 = vadd.f32 %v3373_v19, %v4512_v33  ;;  %v696_v21 = vmax.f32 %v667_v18, 0.0 }
 0x12a   : > { %v697_v22 = vmax.f32 %v670_v20, 0.0  ;;  %v3374_v23 = vpop.f32.mrb[20].mxu0 }
 0x12b   : > { %v3375_v24 = vpop.f32.mrb[21].mxu0 }
 0x12c   : > { %v4548_v25 = vpack.c.bf16 %v697_v22, %v696_v21  ;;  %v3376_v26 = vadd.f32 %v3375_v24, %v3374_v23  ;;  %v3377_v27 = vpop.f32.mrb[22].mxu0 }
 0x12d   : > { %v3378_v28 = vpop.f32.mrb[23].mxu0 }
 0x12e   : > { %v675_v29 = vadd.f32 %v3376_v26, %v4512_v33  ;;  %v3379_v30 = vadd.f32 %v3378_v28, %v3377_v27  ;;  %3656 = vmatpush3.bf16.msra.mxu1 %v4548_v25  ;;  %3710 = vmatpush3.bf16.msra.mxu0 %v4548_v25  ;;  %v4173_v26 = vld [vmem:[%s5322_s4 + $0x40] sm:$0xff]   ;;  %v4175_v28 = vld [vmem:[%s5322_s4 + $0x48] sm:$0xff]  }
 0x12f   : > { %3657 = vmatprep.subr.bf16.mxu1 %v4321_v31  ;;  %3711 = vmatprep.subr.bf16.mxu0 %v4321_v31  ;;  %v4174_v27 = vld [vmem:[%s5322_s4] sm:$0xff]  }
 0x130   : > { %v678_v32 = vadd.f32 %v3379_v30, %v4512_v33  ;;  %v698_v34 = vmax.f32 %v675_v29, 0.0  ;;  %v4176_v29 = vld [vmem:[%s5322_s4 + $0x8] sm:$0xff]   ;;  %v4177_v30 = vld [vmem:[%s5322_s4 + $0x50] sm:$0xff]  }
 0x132   : > { %v699_v35 = vmax.f32 %v678_v32, 0.0  ;;  %v3380_v36 = vpop.f32.mrb[24].mxu0 }
 0x133   : > { %v3381_v37 = vpop.f32.mrb[25].mxu0 }
 0x134   : > { %v4556_v38 = vpack.c.bf16 %v699_v35, %v698_v34  ;;  %v3382_v39 = vadd.f32 %v3381_v37, %v3380_v36  ;;  %v3383_v40 = vpop.f32.mrb[26].mxu0  ;;  %v4178_v35 = vld [vmem:[%s5322_s4 + $0x10] sm:$0xff]  }
 0x135   : > { %v3384_v41 = vpop.f32.mrb[27].mxu0 }
 0x136   : > { %v683_v42 = vadd.f32 %v3382_v39, %v4512_v33  ;;  %3658 = vmatpush3.bf16.msra.mxu1 %v4556_v38  ;;  %3712 = vmatpush3.bf16.msra.mxu0 %v4556_v38  ;;  %v4158_v33 = vld [vmem:[%s5321_s3 + $0x18] sm:$0xff]  }
 0x137   : > { %3659 = vmatprep.subr.bf16.mxu1 %v4321_v31  ;;  %3713 = vmatprep.subr.bf16.mxu0 %v4321_v31 }
 0x138   : > { %v700_v43 = vmax.f32 %v683_v42, 0.0 }
 0x13a   : > { %v707_v44 = vpack.c.bf16 %v700_v43, %v700_v43 }
 0x13c   : > { %v4563_v46 = vsel %vm719_vm1, %v707_v44, 0  ;;  %v4180_v44 = vld [vmem:[%s5322_s4 + $0x18] sm:$0xff]  }
 0x13d   : > { %3660 = vmatpush3.bf16.msra.mxu1 %v4563_v46  ;;  %3714 = vmatpush3.bf16.msra.mxu0 %v4563_v46 }
 0x13e   : > { %3665 = vmatprep.subr.bf16.mxu1 %v4321_v31  ;;  %3737 = vmatprep.subr.bf16.mxu0 %v4321_v31 }
 0x140   : > { %3662 = vmatmul.mubr.msk.bf16.vlgmr.msra.gmra.mrb[0].mxu1 %vm715_vm2, %v4157_v47  ;;  %3716 = vmatmul.mubr.msk.bf16.vlgmr.msra.gmra.mrb[28].mxu0 %vm715_vm2, %v4158_v33  ;;  %v4182_v47 = vld [vmem:[%s5322_s4 + $0x20] sm:$0xff]   ;;  %v4183_v33 = vld [vmem:[%s5322_s4 + $0x68] sm:$0xff]  }
 0x141   : > { %3666 = vmatpush3.bf16.msra.mxu1 %v4516_v45  ;;  %3738 = vmatpush3.bf16.msra.mxu0 %v4516_v45 }
 0x142   : > { %3667 = vmatprep.subr.bf16.mxu1 %v4321_v31  ;;  %3739 = vmatprep.subr.bf16.mxu0 %v4321_v31 }
 0x143   : > { %3679 = vmatprep.mubr.msk.bf16.mxu1 %vm4322_vm0, %v4321_v31  ;;  %3751 = vmatprep.mubr.msk.bf16.mxu0 %vm4322_vm0, %v4321_v31 }
 0x145   : > { %3668 = vmatpush3.bf16.msra.mxu1 %v4524_v56  ;;  %3740 = vmatpush3.bf16.msra.mxu0 %v4524_v56 }
 0x146   : > { %3669 = vmatprep.subr.bf16.mxu1 %v4321_v31  ;;  %3741 = vmatprep.subr.bf16.mxu0 %v4321_v31 }
 0x149   : > { %3670 = vmatpush3.bf16.msra.mxu1 %v4532_v3  ;;  %3742 = vmatpush3.bf16.msra.mxu0 %v4532_v3 }
 0x14a   : > { %3671 = vmatprep.subr.bf16.mxu1 %v4321_v31  ;;  %3743 = vmatprep.subr.bf16.mxu0 %v4321_v31 }
 0x14d   : > { %3672 = vmatpush3.bf16.msra.mxu1 %v4540_v14  ;;  %3744 = vmatpush3.bf16.msra.mxu0 %v4540_v14 }
 0x14e   : > { %3673 = vmatprep.subr.bf16.mxu1 %v4321_v31  ;;  %3745 = vmatprep.subr.bf16.mxu0 %v4321_v31 }
 0x151   : > { %3674 = vmatpush3.bf16.msra.mxu1 %v4548_v25  ;;  %3746 = vmatpush3.bf16.msra.mxu0 %v4548_v25 }
 0x152   : > { %3675 = vmatprep.subr.bf16.mxu1 %v4321_v31  ;;  %3747 = vmatprep.subr.bf16.mxu0 %v4321_v31 }
 0x155   : > { %3676 = vmatpush3.bf16.msra.mxu1 %v4556_v38  ;;  %3748 = vmatpush3.bf16.msra.mxu0 %v4556_v38 }
 0x156   : > { %3677 = vmatprep.subr.bf16.mxu1 %v4321_v31  ;;  %3749 = vmatprep.subr.bf16.mxu0 %v4321_v31 }
 0x159   : > { %3678 = vmatpush3.bf16.msra.mxu1 %v4563_v46  ;;  %3750 = vmatpush3.bf16.msra.mxu0 %v4563_v46 }
 0x15a   : > { %3683 = vmatprep.subr.bf16.mxu1 %v4321_v31  ;;  %3773 = vmatprep.subr.bf16.mxu0 %v4321_v31 }
 0x15c   : > { %3680 = vmatmul.mubr.msk.bf16.vlgmr.msra.gmra.mrb[4].mxu1 %vm715_vm2, %v4159_v48  ;;  %3752 = vmatmul.mubr.msk.bf16.vlgmr.msra.gmra.mrb[32].mxu0 %vm715_vm2, %v4160_v49  ;;  %v4184_v48 = vld [vmem:[%s5322_s4 + $0x28] sm:$0xff]   ;;  %v4185_v49 = vld [vmem:[%s5322_s4 + $0x70] sm:$0xff]  }
 0x15d   : > { %3684 = vmatpush3.bf16.msra.mxu1 %v4516_v45  ;;  %3774 = vmatpush3.bf16.msra.mxu0 %v4516_v45 }
 0x15e   : > { %3685 = vmatprep.subr.bf16.mxu1 %v4321_v31  ;;  %3775 = vmatprep.subr.bf16.mxu0 %v4321_v31 }
 0x15f   : > { %3697 = vmatprep.mubr.msk.bf16.mxu1 %vm4322_vm0, %v4321_v31  ;;  %3787 = vmatprep.mubr.msk.bf16.mxu0 %vm4322_vm0, %v4321_v31 }
 0x161   : > { %3686 = vmatpush3.bf16.msra.mxu1 %v4524_v56  ;;  %3776 = vmatpush3.bf16.msra.mxu0 %v4524_v56 }
 0x162   : > { %3687 = vmatprep.subr.bf16.mxu1 %v4321_v31  ;;  %3777 = vmatprep.subr.bf16.mxu0 %v4321_v31 }
 0x165   : > { %3688 = vmatpush3.bf16.msra.mxu1 %v4532_v3  ;;  %3778 = vmatpush3.bf16.msra.mxu0 %v4532_v3 }
 0x166   : > { %3689 = vmatprep.subr.bf16.mxu1 %v4321_v31  ;;  %3779 = vmatprep.subr.bf16.mxu0 %v4321_v31 }
 0x169   : > { %3690 = vmatpush3.bf16.msra.mxu1 %v4540_v14  ;;  %3780 = vmatpush3.bf16.msra.mxu0 %v4540_v14 }
 0x16a   : > { %3691 = vmatprep.subr.bf16.mxu1 %v4321_v31  ;;  %3781 = vmatprep.subr.bf16.mxu0 %v4321_v31 }
 0x16d   : > { %3692 = vmatpush3.bf16.msra.mxu1 %v4548_v25  ;;  %3782 = vmatpush3.bf16.msra.mxu0 %v4548_v25 }
 0x16e   : > { %3693 = vmatprep.subr.bf16.mxu1 %v4321_v31  ;;  %3783 = vmatprep.subr.bf16.mxu0 %v4321_v31 }
 0x171   : > { %3694 = vmatpush3.bf16.msra.mxu1 %v4556_v38  ;;  %3784 = vmatpush3.bf16.msra.mxu0 %v4556_v38 }
 0x172   : > { %3695 = vmatprep.subr.bf16.mxu1 %v4321_v31  ;;  %3785 = vmatprep.subr.bf16.mxu0 %v4321_v31 }
 0x175   : > { %3696 = vmatpush3.bf16.msra.mxu1 %v4563_v46  ;;  %3786 = vmatpush3.bf16.msra.mxu0 %v4563_v46 }
 0x176   : > { %3719 = vmatprep.subr.bf16.mxu1 %v4321_v31  ;;  %3809 = vmatprep.subr.bf16.mxu0 %v4321_v31 }
 0x178   : > { %3698 = vmatmul.mubr.msk.bf16.vlgmr.msra.gmra.mrb[8].mxu1 %vm715_vm2, %v4161_v50  ;;  %3788 = vmatmul.mubr.msk.bf16.vlgmr.msra.gmra.mrb[36].mxu0 %vm715_vm2, %v4162_v51  ;;  %v4186_v50 = vld [vmem:[%s5322_s4 + $0x30] sm:$0xff]   ;;  %v4187_v51 = vld [vmem:[%s5322_s4 + $0x78] sm:$0xff]  }
 0x179   : > { %3720 = vmatpush3.bf16.msra.mxu1 %v4516_v45  ;;  %3810 = vmatpush3.bf16.msra.mxu0 %v4516_v45 }
 0x17a   : > { %3721 = vmatprep.subr.bf16.mxu1 %v4321_v31  ;;  %3811 = vmatprep.subr.bf16.mxu0 %v4321_v31 }
 0x17b   : > { %3733 = vmatprep.mubr.msk.bf16.mxu1 %vm4322_vm0, %v4321_v31  ;;  %3823 = vmatprep.mubr.msk.bf16.mxu0 %vm4322_vm0, %v4321_v31 }
 0x17d   : > { %3722 = vmatpush3.bf16.msra.mxu1 %v4524_v56  ;;  %3812 = vmatpush3.bf16.msra.mxu0 %v4524_v56 }
 0x17e   : > { %3723 = vmatprep.subr.bf16.mxu1 %v4321_v31  ;;  %3813 = vmatprep.subr.bf16.mxu0 %v4321_v31 }
 0x181   : > { %3724 = vmatpush3.bf16.msra.mxu1 %v4532_v3  ;;  %3814 = vmatpush3.bf16.msra.mxu0 %v4532_v3 }
 0x182   : > { %3725 = vmatprep.subr.bf16.mxu1 %v4321_v31  ;;  %3815 = vmatprep.subr.bf16.mxu0 %v4321_v31 }
 0x185   : > { %3726 = vmatpush3.bf16.msra.mxu1 %v4540_v14  ;;  %3816 = vmatpush3.bf16.msra.mxu0 %v4540_v14 }
 0x186   : > { %3727 = vmatprep.subr.bf16.mxu1 %v4321_v31  ;;  %3817 = vmatprep.subr.bf16.mxu0 %v4321_v31 }
 0x189   : > { %3728 = vmatpush3.bf16.msra.mxu1 %v4548_v25  ;;  %3818 = vmatpush3.bf16.msra.mxu0 %v4548_v25 }
 0x18a   : > { %3729 = vmatprep.subr.bf16.mxu1 %v4321_v31  ;;  %3819 = vmatprep.subr.bf16.mxu0 %v4321_v31 }
 0x18d   : > { %3730 = vmatpush3.bf16.msra.mxu1 %v4556_v38  ;;  %3820 = vmatpush3.bf16.msra.mxu0 %v4556_v38 }
 0x18e   : > { %3731 = vmatprep.subr.bf16.mxu1 %v4321_v31  ;;  %3821 = vmatprep.subr.bf16.mxu0 %v4321_v31 }
 0x191   : > { %3732 = vmatpush3.bf16.msra.mxu1 %v4563_v46  ;;  %3822 = vmatpush3.bf16.msra.mxu0 %v4563_v46 }
 0x192   : > { %3755 = vmatprep.subr.bf16.mxu1 %v4321_v31  ;;  %3845 = vmatprep.subr.bf16.mxu0 %v4321_v31 }
 0x194   : > { %3734 = vmatmul.mubr.msk.bf16.vlgmr.msra.gmra.mrb[12].mxu1 %vm715_vm2, %v4163_v52  ;;  %3824 = vmatmul.mubr.msk.bf16.vlgmr.msra.gmra.mrb[40].mxu0 %vm715_vm2, %v4164_v53  ;;  %v4188_v52 = vld [vmem:[%s5322_s4 + $0x38] sm:$0xff]  }
 0x195   : > { %3756 = vmatpush3.bf16.msra.mxu1 %v4516_v45  ;;  %3846 = vmatpush3.bf16.msra.mxu0 %v4516_v45 }
 0x196   : > { %3757 = vmatprep.subr.bf16.mxu1 %v4321_v31  ;;  %3847 = vmatprep.subr.bf16.mxu0 %v4321_v31 }
 0x197   : > { %3769 = vmatprep.mubr.msk.bf16.mxu1 %vm4322_vm0, %v4321_v31  ;;  %3859 = vmatprep.mubr.msk.bf16.mxu0 %vm4322_vm0, %v4321_v31 }
 0x199   : > { %3758 = vmatpush3.bf16.msra.mxu1 %v4524_v56  ;;  %3848 = vmatpush3.bf16.msra.mxu0 %v4524_v56 }
 0x19a   : > { %3759 = vmatprep.subr.bf16.mxu1 %v4321_v31  ;;  %3849 = vmatprep.subr.bf16.mxu0 %v4321_v31 }
 0x19d   : > { %3760 = vmatpush3.bf16.msra.mxu1 %v4532_v3  ;;  %3850 = vmatpush3.bf16.msra.mxu0 %v4532_v3 }
 0x19e   : > { %3761 = vmatprep.subr.bf16.mxu1 %v4321_v31  ;;  %3851 = vmatprep.subr.bf16.mxu0 %v4321_v31 }
 0x1a1   : > { %3762 = vmatpush3.bf16.msra.mxu1 %v4540_v14  ;;  %3852 = vmatpush3.bf16.msra.mxu0 %v4540_v14 }
 0x1a2   : > { %3763 = vmatprep.subr.bf16.mxu1 %v4321_v31  ;;  %3853 = vmatprep.subr.bf16.mxu0 %v4321_v31 }
 0x1a5   : > { %3764 = vmatpush3.bf16.msra.mxu1 %v4548_v25  ;;  %3854 = vmatpush3.bf16.msra.mxu0 %v4548_v25 }
 0x1a6   : > { %3765 = vmatprep.subr.bf16.mxu1 %v4321_v31  ;;  %3855 = vmatprep.subr.bf16.mxu0 %v4321_v31 }
 0x1a9   : > { %3766 = vmatpush3.bf16.msra.mxu1 %v4556_v38  ;;  %3856 = vmatpush3.bf16.msra.mxu0 %v4556_v38 }
 0x1aa   : > { %3767 = vmatprep.subr.bf16.mxu1 %v4321_v31  ;;  %3857 = vmatprep.subr.bf16.mxu0 %v4321_v31 }
 0x1ad   : > { %3768 = vmatpush3.bf16.msra.mxu1 %v4563_v46  ;;  %3858 = vmatpush3.bf16.msra.mxu0 %v4563_v46 }
 0x1ae   : > { %3791 = vmatprep.subr.bf16.mxu1 %v4321_v31  ;;  %3881 = vmatprep.subr.bf16.mxu0 %v4321_v31 }
 0x1b0   : > { %3770 = vmatmul.mubr.msk.bf16.vlgmr.msra.gmra.mrb[16].mxu1 %vm715_vm2, %v4165_v54  ;;  %3860 = vmatmul.mubr.msk.bf16.vlgmr.msra.gmra.mrb[44].mxu0 %vm715_vm2, %v4166_v55 }
 0x1b1   : > { %3792 = vmatpush3.bf16.msra.mxu1 %v4516_v45  ;;  %3882 = vmatpush3.bf16.msra.mxu0 %v4516_v45 }
 0x1b2   : > { %3793 = vmatprep.subr.bf16.mxu1 %v4321_v31  ;;  %3883 = vmatprep.subr.bf16.mxu0 %v4321_v31 }
 0x1b3   : > { %3805 = vmatprep.mubr.msk.bf16.mxu1 %vm4322_vm0, %v4321_v31  ;;  %3895 = vmatprep.mubr.msk.bf16.mxu0 %vm4322_vm0, %v4321_v31 }
 0x1b5   : > { %3794 = vmatpush3.bf16.msra.mxu1 %v4524_v56  ;;  %3884 = vmatpush3.bf16.msra.mxu0 %v4524_v56 }
 0x1b6   : > { %3795 = vmatprep.subr.bf16.mxu1 %v4321_v31  ;;  %3885 = vmatprep.subr.bf16.mxu0 %v4321_v31 }
 0x1b9   : > { %3796 = vmatpush3.bf16.msra.mxu1 %v4532_v3  ;;  %3886 = vmatpush3.bf16.msra.mxu0 %v4532_v3 }
 0x1ba   : > { %3797 = vmatprep.subr.bf16.mxu1 %v4321_v31  ;;  %3887 = vmatprep.subr.bf16.mxu0 %v4321_v31 }
 0x1bd   : > { %3798 = vmatpush3.bf16.msra.mxu1 %v4540_v14  ;;  %3888 = vmatpush3.bf16.msra.mxu0 %v4540_v14 }
 0x1be   : > { %3799 = vmatprep.subr.bf16.mxu1 %v4321_v31  ;;  %3889 = vmatprep.subr.bf16.mxu0 %v4321_v31 }
 0x1c1   : > { %3800 = vmatpush3.bf16.msra.mxu1 %v4548_v25  ;;  %3890 = vmatpush3.bf16.msra.mxu0 %v4548_v25 }
 0x1c2   : > { %3801 = vmatprep.subr.bf16.mxu1 %v4321_v31  ;;  %3891 = vmatprep.subr.bf16.mxu0 %v4321_v31 }
 0x1c5   : > { %3802 = vmatpush3.bf16.msra.mxu1 %v4556_v38  ;;  %3892 = vmatpush3.bf16.msra.mxu0 %v4556_v38 }
 0x1c6   : > { %3803 = vmatprep.subr.bf16.mxu1 %v4321_v31  ;;  %3893 = vmatprep.subr.bf16.mxu0 %v4321_v31 }
 0x1c9   : > { %3804 = vmatpush3.bf16.msra.mxu1 %v4563_v46  ;;  %3894 = vmatpush3.bf16.msra.mxu0 %v4563_v46 }
 0x1ca   : > { %3827 = vmatprep.subr.bf16.mxu1 %v4321_v31  ;;  %3917 = vmatprep.subr.bf16.mxu0 %v4321_v31 }
 0x1cc   : > { %3806 = vmatmul.mubr.msk.bf16.vlgmr.msra.gmra.mrb[20].mxu1 %vm715_vm2, %v4167_v57  ;;  %3896 = vmatmul.mubr.msk.bf16.vlgmr.msra.gmra.mrb[48].mxu0 %vm715_vm2, %v4168_v58 }
 0x1cd   : > { %3828 = vmatpush3.bf16.msra.mxu1 %v4516_v45  ;;  %3918 = vmatpush3.bf16.msra.mxu0 %v4516_v45 }
 0x1ce   : > { %3829 = vmatprep.subr.bf16.mxu1 %v4321_v31  ;;  %3919 = vmatprep.subr.bf16.mxu0 %v4321_v31 }
 0x1cf   : > { %3841 = vmatprep.mubr.msk.bf16.mxu1 %vm4322_vm0, %v4321_v31  ;;  %3931 = vmatprep.mubr.msk.bf16.mxu0 %vm4322_vm0, %v4321_v31 }
 0x1d1   : > { %3830 = vmatpush3.bf16.msra.mxu1 %v4524_v56  ;;  %3920 = vmatpush3.bf16.msra.mxu0 %v4524_v56 }
 0x1d2   : > { %3831 = vmatprep.subr.bf16.mxu1 %v4321_v31  ;;  %3921 = vmatprep.subr.bf16.mxu0 %v4321_v31 }
 0x1d5   : > { %3832 = vmatpush3.bf16.msra.mxu1 %v4532_v3  ;;  %3922 = vmatpush3.bf16.msra.mxu0 %v4532_v3 }
 0x1d6   : > { %3833 = vmatprep.subr.bf16.mxu1 %v4321_v31  ;;  %3923 = vmatprep.subr.bf16.mxu0 %v4321_v31 }
 0x1d9   : > { %3834 = vmatpush3.bf16.msra.mxu1 %v4540_v14  ;;  %3924 = vmatpush3.bf16.msra.mxu0 %v4540_v14 }
 0x1da   : > { %3835 = vmatprep.subr.bf16.mxu1 %v4321_v31  ;;  %3925 = vmatprep.subr.bf16.mxu0 %v4321_v31 }
 0x1dd   : > { %3836 = vmatpush3.bf16.msra.mxu1 %v4548_v25  ;;  %3926 = vmatpush3.bf16.msra.mxu0 %v4548_v25 }
 0x1de   : > { %3837 = vmatprep.subr.bf16.mxu1 %v4321_v31  ;;  %3927 = vmatprep.subr.bf16.mxu0 %v4321_v31 }
 0x1e1   : > { %3838 = vmatpush3.bf16.msra.mxu1 %v4556_v38  ;;  %3928 = vmatpush3.bf16.msra.mxu0 %v4556_v38 }
 0x1e2   : > { %3839 = vmatprep.subr.bf16.mxu1 %v4321_v31  ;;  %3929 = vmatprep.subr.bf16.mxu0 %v4321_v31 }
 0x1e5   : > { %3840 = vmatpush3.bf16.msra.mxu1 %v4563_v46  ;;  %3930 = vmatpush3.bf16.msra.mxu0 %v4563_v46 }
 0x1e6   : > { %3863 = vmatprep.subr.bf16.mxu1 %v4321_v31 }
 0x1e8   : > { %3842 = vmatmul.mubr.msk.bf16.vlgmr.msra.gmra.mrb[24].mxu1 %vm715_vm2, %v4169_v59  ;;  %3932 = vmatmul.mubr.msk.bf16.vlgmr.msra.gmra.mrb[52].mxu0 %vm715_vm2, %v4172_v60 }
 0x1e9   : > { %3864 = vmatpush3.bf16.msra.mxu1 %v4516_v45  ;;  %3877 = vmatprep.mubr.msk.bf16.mxu1 %vm4322_vm0, %v4321_v31 }
 0x1ea   : > { %3865 = vmatprep.subr.bf16.mxu1 %v4321_v31 }
 0x1ed   : > { %3866 = vmatpush3.bf16.msra.mxu1 %v4524_v56 }
 0x1ee   : > { %3867 = vmatprep.subr.bf16.mxu1 %v4321_v31 }
 0x1f1   : > { %3868 = vmatpush3.bf16.msra.mxu1 %v4532_v3 }
 0x1f2   : > { %3869 = vmatprep.subr.bf16.mxu1 %v4321_v31 }
 0x1f5   : > { %3870 = vmatpush3.bf16.msra.mxu1 %v4540_v14 }
 0x1f6   : > { %3871 = vmatprep.subr.bf16.mxu1 %v4321_v31 }
 0x1f9   : > { %3872 = vmatpush3.bf16.msra.mxu1 %v4548_v25 }
 0x1fa   : > { %3873 = vmatprep.subr.bf16.mxu1 %v4321_v31 }
 0x1fd   : > { %3874 = vmatpush3.bf16.msra.mxu1 %v4556_v38 }
 0x1fe   : > { %3875 = vmatprep.subr.bf16.mxu1 %v4321_v31 }
 0x201   : > { %3876 = vmatpush3.bf16.msra.mxu1 %v4563_v46 }
 0x202   : > { %3899 = vmatprep.subr.bf16.mxu1 %v4321_v31 }
 0x204   : > { %3878 = vmatmul.mubr.msk.bf16.vlgmr.msra.gmra.mrb[28].mxu1 %vm715_vm2, %v4170_v61 }
 0x205   : > { %3900 = vmatpush3.bf16.msra.mxu1 %v4516_v45  ;;  %3913 = vmatprep.mubr.msk.bf16.mxu1 %vm4322_vm0, %v4321_v31 }
 0x206   : > { %3901 = vmatprep.subr.bf16.mxu1 %v4321_v31 }
 0x209   : > { %3902 = vmatpush3.bf16.msra.mxu1 %v4524_v56 }
 0x20a   : > { %3903 = vmatprep.subr.bf16.mxu1 %v4321_v31 }
 0x20d   : > { %3904 = vmatpush3.bf16.msra.mxu1 %v4532_v3 }
 0x20e   : > { %3905 = vmatprep.subr.bf16.mxu1 %v4321_v31 }
 0x211   : > { %3906 = vmatpush3.bf16.msra.mxu1 %v4540_v14 }
 0x212   : > { %3907 = vmatprep.subr.bf16.mxu1 %v4321_v31 }
 0x213   : > { %v4846_v62 = vpop.f32.mrb[0].mxu1  ;;  %v913_v45 = vpop.f32.mrb[28].mxu0 }
 0x214   : > { %v3663_v63 = vpop.f32.mrb[1].mxu1  ;;  %v3717_v0 = vpop.f32.mrb[29].mxu0 }
 0x215   : > { %v4848_v1 = vpop.f32.mrb[2].mxu1  ;;  %3908 = vmatpush3.bf16.msra.mxu1 %v4548_v25  ;;  %v916_v56 = vpop.f32.mrb[30].mxu0 }
 0x216   : > { %v3664_v2 = vpop.f32.mrb[3].mxu1  ;;  %3909 = vmatprep.subr.bf16.mxu1 %v4321_v31  ;;  %v4046_v3 = vpack.i.bf16 %v916_v56, %v913_v45  ;;  %v3718_v4 = vpop.f32.mrb[31].mxu0 }
 0x218   : > { %4047 = vrot.lane.b32.xlu0 %v4046_v3, %s5331_s25 }
 0x219   : > { %3910 = vmatpush3.bf16.msra.mxu1 %v4556_v38  ;;  %v4179_v38 = vld [vmem:[%s5322_s4 + $0x58] sm:$0xff]  }
 0x21a   : > { %3911 = vmatprep.subr.bf16.mxu1 %v4321_v31 }
 0x21d   : > { %3912 = vmatpush3.bf16.msra.mxu1 %v4563_v46  ;;  %v4181_v46 = vld [vmem:[%s5322_s4 + $0x60] sm:$0xff]  }
 0x21e   : > { %3514 = vmatprep.subr.bf16.mxu1 %v4173_v26  ;;  %v4193_v26 = vld [vmem:[%s5322_s4 + $0xd0] sm:$0xff]  }
 0x220   : > { %3914 = vmatmul.mubr.msk.bf16.vlgmr.msra.gmra.mrb[32].mxu1 %vm715_vm2, %v4171_v5 }
 0x221   : > { %3515 = vmatpush3.bf16.msra.mxu1 %v4174_v27 }
 0x222   : > { %3516 = vmatprep.subr.bf16.mxu1 %v4175_v28 }
 0x225   : > { %3517 = vmatpush3.bf16.msra.mxu1 %v4176_v29  ;;  %v4194_v29 = vld [vmem:[%s5322_s4 + $0x90] sm:$0xff]  }
 0x226   : > { %3518 = vmatprep.subr.bf16.mxu1 %v4177_v30 }
 0x229   : > { %3519 = vmatpush3.bf16.msra.mxu1 %v4178_v35 }
 0x22a   : > { %3520 = vmatprep.subr.bf16.mxu1 %v4179_v38 }
 0x22d   : > { %3521 = vmatpush3.bf16.msra.mxu1 %v4180_v44  ;;  %v4196_v44 = vld [vmem:[%s5322_s4 + $0x98] sm:$0xff]  }
 0x22e   : > { %3522 = vmatprep.subr.bf16.mxu1 %v4181_v46 }
 0x22f   : > { %v809_v6 = vpop.f32.mrb[4].mxu1  ;;  %v1017_v7 = vpop.f32.mrb[32].mxu0 }
 0x230   : > { %v3681_v8 = vpop.f32.mrb[5].mxu1  ;;  %v3753_v9 = vpop.f32.mrb[33].mxu0 }
 0x231   : > { %v812_v10 = vpop.f32.mrb[6].mxu1  ;;  %v1020_v11 = vpop.f32.mrb[34].mxu0  ;;  %3523 = vmatpush3.bf16.msra.mxu1 %v4182_v47 }
 0x232   : > { %v4056_v12 = vpack.i.bf16 %v812_v10, %v809_v6  ;;  %v4051_v13 = vpack.i.bf16 %v1020_v11, %v1017_v7  ;;  %v3682_v14 = vpop.f32.mrb[7].mxu1  ;;  %v3754_v15 = vpop.f32.mrb[35].mxu0  ;;  %3524 = vmatprep.subr.bf16.mxu1 %v4183_v33  ;;  %v4198_v33 = vld [vmem:[%s5322_s4 + $0xa0] sm:$0xff]  }
 0x233   : > { %v4191_v14 = vld [vmem:[%s5322_s4 + $0xc8] sm:$0xff]  }
 0x234   : > { %4052 = vrot.lane.b32.xlu0 %v4051_v13, %s4324_s29  ;;  %v4190_v13 = vld [vmem:[%s5322_s4 + $0x80] sm:$0xff]  }
 0x235   : > { %3525 = vmatpush3.bf16.msra.mxu1 %v4184_v48  ;;  %v4199_v48 = vld [vmem:[%s5322_s4 + $0xe8] sm:$0xff]  }
 0x236   : > { %3526 = vmatprep.subr.bf16.mxu1 %v4185_v49  ;;  %v4200_v49 = vld [vmem:[%s5322_s4 + $0xa8] sm:$0xff]  }
 0x238   : > { %4057 = vrot.lane.b32.xlu0 %v4056_v12, %s4324_s29  ;;  %v4189_v12 = vld [vmem:[%s5322_s4 + $0xc0] sm:$0xff]  }
 0x239   : > { %3527 = vmatpush3.bf16.msra.mxu1 %v4186_v50  ;;  %3536 = vmatprep.subr.bf16.mxu0 %v4189_v12 }
 0x23a   : > { %3528 = vmatprep.subr.bf16.mxu1 %v4187_v51  ;;  %3537 = vmatpush3.bf16.msra.mxu0 %v4190_v13 }
 0x23b   : > { %3538 = vmatprep.subr.bf16.mxu0 %v4191_v14 }
 0x23d   : > { %3529 = vmatpush3.bf16.msra.mxu1 %v4188_v52 }
 0x23e   : > { %3947 = vmatprep.subr.bf16.mxu1 %v4321_v31 }
 0x24b   : > { %v861_v16 = vpop.f32.mrb[8].mxu1  ;;  %v1121_v17 = vpop.f32.mrb[36].mxu0 }
 0x24c   : > { %v3699_v18 = vpop.f32.mrb[9].mxu1  ;;  %v3789_v19 = vpop.f32.mrb[37].mxu0 }
 0x24d   : > { %v864_v20 = vpop.f32.mrb[10].mxu1  ;;  %v1124_v21 = vpop.f32.mrb[38].mxu0 }
 0x24e   : > { %v4061_v22 = vpack.i.bf16 %v864_v20, %v861_v16  ;;  %v3700_v23 = vpop.f32.mrb[11].mxu1  ;;  %v4066_v24 = vpack.i.bf16 %v1124_v21, %v1121_v17  ;;  %v3790_v25 = vpop.f32.mrb[39].mxu0  ;;  %v4192_v21 = vld [vmem:[%s5322_s4 + $0x88] sm:$0xff]  }
 0x24f   : > { %3539 = vmatpush3.bf16.msra.mxu0 %v4192_v21 }
 0x250   : > { %4062 = vrot.lane.b32.xlu1 %v4061_v22, %s4325_s14  ;;  %4067 = vrot.lane.b32.xlu0 %v4066_v24, %s5331_s25 }
 0x251   : > { %3540 = vmatprep.subr.bf16.mxu0 %v4193_v26 }
 0x253   : > { %3541 = vmatpush3.bf16.msra.mxu0 %v4194_v29 }
 0x267   : > { %v4879_v32 = vpop.f32.mrb[12].mxu1  ;;  %v1225_v34 = vpop.f32.mrb[40].mxu0 }
 0x268   : > { %v3735_v36 = vpop.f32.mrb[13].mxu1  ;;  %v3825_v37 = vpop.f32.mrb[41].mxu0 }
 0x269   : > { %v4887_v39 = vpop.f32.mrb[14].mxu1  ;;  %v1228_v40 = vpop.f32.mrb[42].mxu0  ;;  %v4195_v36 = vld [vmem:[%s5322_s4 + $0xd8] sm:$0xff]  }
 0x26a   : > { %v4071_v41 = vpack.i.bf16 %v1228_v40, %v1225_v34  ;;  %v3736_v42 = vpop.f32.mrb[15].mxu1  ;;  %v3826_v43 = vpop.f32.mrb[43].mxu0  ;;  %3542 = vmatprep.subr.bf16.mxu0 %v4195_v36 }
 0x26b   : > { %3543 = vmatpush3.bf16.msra.mxu0 %v4196_v44 }
 0x26c   : > { %4072 = vrot.lane.b32.xlu1 %v4071_v41, %s4324_s29 }
 0x283   : > { %v1069_v53 = vpop.f32.mrb[16].mxu1  ;;  %v1329_v54 = vpop.f32.mrb[44].mxu0 }
 0x284   : > { %v3771_v55 = vpop.f32.mrb[17].mxu1  ;;  %v3861_v57 = vpop.f32.mrb[45].mxu0 }
 0x285   : > { %v1072_v58 = vpop.f32.mrb[18].mxu1  ;;  %v1332_v59 = vpop.f32.mrb[46].mxu0 }
 0x286   : > { %v4076_v60 = vpack.i.bf16 %v1072_v58, %v1069_v53  ;;  %v3772_v61 = vpop.f32.mrb[19].mxu1  ;;  %v4101_v45 = vpack.i.bf16 %v1332_v59, %v1329_v54  ;;  %v3862_v63 = vpop.f32.mrb[47].mxu0 }
 0x287   : > { %v4202_v61 = vld [vmem:[%s5322_s4 + $0xb0] sm:$0xff]   ;;  %v4204_v63 = vld [vmem:[%s5322_s4 + $0xb8] sm:$0xff]  }
 0x288   : > { %4077 = vrot.lane.b32.xlu1 %v4076_v60, %s4325_s14  ;;  %v4201_v60 = vld [vmem:[%s5322_s4 + $0xf0] sm:$0xff]  }
 0x28a   : > { %v4048_v9 = vpop.permute.xlu0 %4047 }
 0x28b   : > { %v4050_v30 = vunpack.i.h.bf16 %v4048_v9  ;;  %v4049_v34 = vunpack.i.l.bf16 %v4048_v9 }
 0x29f   : > { %v4919_v0 = vpop.f32.mrb[20].mxu1  ;;  %v1433_v56 = vpop.f32.mrb[48].mxu0 }
 0x2a0   : > { %v3807_v2 = vpop.f32.mrb[21].mxu1  ;;  %v3897_v3 = vpop.f32.mrb[49].mxu0 }
 0x2a1   : > { %v4921_v4 = vpop.f32.mrb[22].mxu1  ;;  %v1436_v5 = vpop.f32.mrb[50].mxu0 }
 0x2a2   : > { %v4081_v6 = vpack.i.bf16 %v1436_v5, %v1433_v56  ;;  %v3808_v7 = vpop.f32.mrb[23].mxu1  ;;  %v3898_v8 = vpop.f32.mrb[51].mxu0 }
 0x2a4   : > { %4082 = vrot.lane.b32.xlu1 %v4081_v6, %s4324_s29  ;;  %s377_s29 = sand.u32 1, %s4311_s18  }
 0x2a5   : > { %s378_s30 = scalar_lea.vmem [#allocation2], %s377_s29  ;;  %s3056_s25 = scalar_lea.sflag [#allocation3], %s377_s29 }
 0x2a6   : > { %v4924_v10 = vpop.permute.xlu0 %4052  ;;  %s3068_s16 = sshll.u32 %s378_s30, 4  ;;  %s5278_s16 = int_to_ptr.vmem [resolvable:$true] %s3068_s16 }
 0x2a7   : > { %v4055_v6 = vunpack.i.h.bf16 %v4924_v10  ;;  %v4054_v7 = vunpack.i.l.bf16 %v4924_v10  ;;  %s4257_s15 = scalar_lea.vmem %s5278_s16, 16 }
 0x2a8   : > { %p4258_p11 = scmp.ne.s32.totalorder %s5278_s16, %s4257_s15 }
 0x2a9   : > { %v1649_v14 = vsel %vm1640_vm4, %v4879_v32, %v4054_v7  ;;  %v3261_v7 = vld [vmem:[%s5324_s6 + $0x8] sm:$0x3] }
 0x2aa   : > { %v4058_v11 = vpop.permute.xlu0 %4057  ;;  %p4259_p12 = pnand %p4258_p11, %p4425_p5 }
 0x2ab   : > { %v4060_v27 = vunpack.i.h.bf16 %v4058_v11  ;;  %v4059_v28 = vunpack.i.l.bf16 %v4058_v11 }
 0x2ac   : > { %p4260_p13 = pneg %p4259_p12 }
 0x2ad   : > { %v1642_v40 = vsel %vm1640_vm4, %v4848_v1, %v4060_v27  ;;  %v1641_v41 = vsel %vm1640_vm4, %v4846_v62, %v4059_v28  ;;  %v4197_v62 = vld [vmem:[%s5322_s4 + $0xe0] sm:$0xff]  }
 0x2ae   : > { %3544 = vmatprep.subr.bf16.mxu0 %v4197_v62 }
 0x2af   : > { %3545 = vmatpush3.bf16.msra.mxu0 %v4198_v33 }
 0x2b0   : > { %3546 = vmatprep.subr.bf16.mxu0 %v4199_v48 }
 0x2b3   : > { %3547 = vmatpush3.bf16.msra.mxu0 %v4200_v49 }
 0x2b4   : > { %3548 = vmatprep.subr.bf16.mxu0 %v4201_v60 }
 0x2b7   : > { %3549 = vmatpush3.bf16.msra.mxu0 %v4202_v61 }
 0x2bb   : > { %v1277_v15 = vpop.f32.mrb[24].mxu1  ;;  %v4935_v16 = vpop.f32.mrb[52].mxu0 }
 0x2bc   : > { %v3843_v17 = vpop.f32.mrb[25].mxu1  ;;  %v3933_v18 = vpop.f32.mrb[53].mxu0 }
 0x2bd   : > { %v1280_v19 = vpop.f32.mrb[26].mxu1  ;;  %v4937_v20 = vpop.f32.mrb[54].mxu0 }
 0x2be   : > { %v4086_v22 = vpack.i.bf16 %v1280_v19, %v1277_v15  ;;  %v3844_v23 = vpop.f32.mrb[27].mxu1  ;;  %v4096_v24 = vpack.i.bf16 %v4937_v20, %v4935_v16  ;;  %v3934_v25 = vpop.f32.mrb[55].mxu0  ;;  %v1650_v15 = vsel %vm1640_vm4, %v4887_v39, %v4055_v6  ;;  %v3255_v6 = vld [vmem:[%s5324_s6 + $0x2] sm:$0x3] }
 0x2c0   : > { %4087 = vrot.lane.b32.xlu1 %v4086_v22, %s4325_s14 }
 0x2c2   : > { %v4063_v35 = vpop.permute.xlu1 %4062  ;;  %v4068_v5 = vpop.permute.xlu0 %4067 }
 0x2c3   : > { %v4065_v37 = vunpack.i.h.bf16 %v4063_v35  ;;  %v4064_v38 = vunpack.i.l.bf16 %v4063_v35  ;;  %v4070_v9 = vunpack.i.h.bf16 %v4068_v5  ;;  %v4069_v11 = vunpack.i.l.bf16 %v4068_v5  ;;  %v3257_v5 = vld [vmem:[%s5324_s6 + $0x4] sm:$0x3] }
 0x2c4   : > { %4102 = vrot.lane.b32.xlu1 %v4101_v45, %s5337_s26  ;;  %v4203_v45 = vld [vmem:[%s5322_s4 + $0xf8] sm:$0xff]  }
 0x2c5   : > { %v1645_v42 = vsel %vm1643_vm3, %v1642_v40, %v4065_v37  ;;  %v1644_v43 = vsel %vm1643_vm3, %v1641_v41, %v4064_v38  ;;  %3550 = vmatprep.subr.bf16.mxu0 %v4203_v45 }
 0x2c6   : > { %v1647_v46 = vsel %vm1646_vm5, %v1644_v43, %v4049_v34  ;;  %v1648_v47 = vsel %vm1646_vm5, %v1645_v42, %v4050_v30  ;;  %3551 = vmatpush3.bf16.msra.mxu0 %v4204_v63 }
 0x2c7   : > { %v1667_v1 = vpack.c.bf16 %v1648_v47, %v1647_v46  ;;  %3935 = vmatprep.subr.bf16.mxu0 %v4321_v31 }
 0x2d7   : > { %v1381_v50 = vpop.f32.mrb[28].mxu1 }
 0x2d8   : > { %v3879_v51 = vpop.f32.mrb[29].mxu1 }
 0x2d9   : > { %v1384_v52 = vpop.f32.mrb[30].mxu1 }
 0x2da   : > { %v3880_v53 = vpop.f32.mrb[31].mxu1 }
 0x2db   : > { %v3221_v53 = vld [vmem:[%s5323_s5] ss:$0 sm:$0xff] }
 0x2de   : > { %v4073_v54 = vpop.permute.xlu1 %4072 }
 0x2df   : > { %v4075_v55 = vunpack.i.h.bf16 %v4073_v54  ;;  %v4074_v57 = vunpack.i.l.bf16 %v4073_v54 }
 0x2e1   : > { %v1655_v58 = vsel %vm1640_vm4, %v4919_v0, %v4074_v57  ;;  %v1656_v59 = vsel %vm1640_vm4, %v4921_v4, %v4075_v55 }
 0x2f3   : > { %v1485_v0 = vpop.f32.mrb[32].mxu1 }
 0x2f4   : > { %v3915_v56 = vpop.f32.mrb[33].mxu1 }
 0x2f5   : > { %v1488_v2 = vpop.f32.mrb[34].mxu1 }
 0x2f6   : > { %v4091_v3 = vpack.i.bf16 %v1488_v2, %v1485_v0  ;;  %v3916_v4 = vpop.f32.mrb[35].mxu1 }
 0x2f7   : > { %v2019_v4 = vld [vmem:[%s5324_s6] sm:$0x3] }
 0x2f8   : > { %4092 = vrot.lane.b32.xlu0 %v4091_v3, %s4325_s14 }
 0x2fa   : > { %v4078_v8 = vpop.permute.xlu1 %4077 }
 0x2fb   : > { %v4080_v12 = vunpack.i.h.bf16 %v4078_v8  ;;  %v4079_v13 = vunpack.i.l.bf16 %v4078_v8  ;;  %v3259_v8 = vld [vmem:[%s5324_s6 + $0x6] sm:$0x3] }
 0x2fc   : > { %4097 = vrot.lane.b32.xlu0 %v4096_v24, %s5337_s26 }
 0x2fd   : > { %v1652_v10 = vsel %vm1643_vm3, %v1650_v15, %v4080_v12  ;;  %v1651_v17 = vsel %vm1643_vm3, %v1649_v14, %v4079_v13  ;;  %v3269_v12 = vld [vmem:[%s5324_s6 + $0x10] sm:$0x3]  ;;  %v3267_v13 = vld [vmem:[%s5324_s6 + $0xe] sm:$0x3]  ;;  %v4205_v14 = vld [vmem:[%s5325_s7 + $0x40] sm:$0xff]  }
 0x2fe   : > { %v1653_v18 = vsel %vm1646_vm5, %v1651_v17, %v4069_v11  ;;  %v1654_v19 = vsel %vm1646_vm5, %v1652_v10, %v4070_v9  ;;  %v3265_v9 = vld [vmem:[%s5324_s6 + $0xc] sm:$0x3]  ;;  %v3263_v11 = vld [vmem:[%s5324_s6 + $0xa] sm:$0x3]  ;;  %v4206_v15 = vld [vmem:[%s5325_s7] sm:$0xff]  }
 0x2ff   : > { %v1668_v21 = vpack.c.bf16 %v1654_v19, %v1653_v18  ;;  %v4207_v10 = vld [vmem:[%s5325_s7 + $0x48] sm:$0xff]   ;;  %v4214_v18 = vld [vmem:[%s5325_s7 + $0xc0] sm:$0xff]  }
 0x300   : > { %v4208_v17 = vld [vmem:[%s5325_s7 + $0x8] sm:$0xff]   ;;  %v4216_v19 = vld [vmem:[%s5325_s7 + $0x80] sm:$0xff]  }
 0x301   : > { %1966 = vmatprep.mubr.bf16.mxu1 %v1668_v21  ;;  %v4209_v21 = vld [vmem:[%s5325_s7 + $0x50] sm:$0xff]  }
 0x302   : > { %1967 = vmatmul.mubr.bf16.vlgmr.msra.gmra.mrb[36].mxu1 %v1667_v1 }
 0x303   : > { %3949 = vmatprep.mubr.msk.bf16.mxu1 %vm4322_vm0, %v4321_v31 }
 0x316   : > { %v4083_v32 = vpop.permute.xlu1 %4082 }
 0x317   : > { %v4085_v34 = vunpack.i.h.bf16 %v4083_v32  ;;  %v4084_v35 = vunpack.i.l.bf16 %v4083_v32  ;;  %v4218_v32 = vld [vmem:[%s5325_s7 + $0xc8] sm:$0xff]  }
 0x319   : > { %v1661_v40 = vsel %vm1640_vm4, %v1381_v50, %v4084_v35  ;;  %v1662_v41 = vsel %vm1640_vm4, %v1384_v52, %v4085_v34 }
 0x332   : > { %v4088_v39 = vpop.permute.xlu1 %4087 }
 0x333   : > { %v4090_v22 = vunpack.i.h.bf16 %v4088_v39  ;;  %v4089_v23 = vunpack.i.l.bf16 %v4088_v39  ;;  %v4220_v39 = vld [vmem:[%s5325_s7 + $0x88] sm:$0xff]  }
 0x335   : > { %v1658_v25 = vsel %vm1643_vm3, %v1656_v59, %v4090_v22  ;;  %v1657_v26 = vsel %vm1643_vm3, %v1655_v58, %v4089_v23  ;;  %v4210_v22 = vld [vmem:[%s5325_s7 + $0x10] sm:$0xff]  }
 0x336   : > { %v4103_v16 = vpop.permute.xlu1 %4102  ;;  %v4222_v23 = vld [vmem:[%s5325_s7 + $0xd0] sm:$0xff]  }
 0x337   : > { %v4105_v20 = vunpack.i.h.bf16 %v4103_v16  ;;  %v4104_v24 = vunpack.i.l.bf16 %v4103_v16  ;;  %v4211_v16 = vld [vmem:[%s5325_s7 + $0x58] sm:$0xff]  }
 0x339   : > { %v1659_v27 = vsel %vm1646_vm5, %v1657_v26, %v4104_v24  ;;  %v1660_v28 = vsel %vm1646_vm5, %v1658_v25, %v4105_v20  ;;  %v4224_v20 = vld [vmem:[%s5325_s7 + $0x90] sm:$0xff]   ;;  %v4212_v24 = vld [vmem:[%s5325_s7 + $0x18] sm:$0xff]   ;;  %v4213_v25 = vld [vmem:[%s5325_s7 + $0x60] sm:$0xff]  }
 0x33a   : > { %v1669_v29 = vpack.c.bf16 %v1660_v28, %v1659_v27  ;;  %v4215_v26 = vld [vmem:[%s5325_s7 + $0x20] sm:$0xff]   ;;  %v4217_v27 = vld [vmem:[%s5325_s7 + $0x68] sm:$0xff]  }
 0x33b   : > { %v4219_v28 = vld [vmem:[%s5325_s7 + $0x28] sm:$0xff]  }
 0x36a   : > { %v4093_v30 = vpop.permute.xlu0 %4092 }
 0x36b   : > { %v4095_v36 = vunpack.i.h.bf16 %v4093_v30  ;;  %v4094_v37 = vunpack.i.l.bf16 %v4093_v30  ;;  %v4223_v30 = vld [vmem:[%s5325_s7 + $0x30] sm:$0xff]  }
 0x36d   : > { %v1664_v44 = vsel %vm1643_vm3, %v1662_v41, %v4095_v36  ;;  %v1663_v46 = vsel %vm1643_vm3, %v1661_v40, %v4094_v37 }
 0x36e   : > { %v4098_v38 = vpop.permute.xlu0 %4097 }
 0x36f   : > { %v4100_v42 = vunpack.i.h.bf16 %v4098_v38  ;;  %v4099_v43 = vunpack.i.l.bf16 %v4098_v38 }
 0x371   : > { %v1665_v47 = vsel %vm1646_vm5, %v1663_v46, %v4099_v43  ;;  %v1666_v62 = vsel %vm1646_vm5, %v1664_v44, %v4100_v42  ;;  %v4225_v42 = vld [vmem:[%s5325_s7 + $0x78] sm:$0xff]  }
 0x372   : > { %v1670_v1 = vpack.c.bf16 %v1666_v62, %v1665_v47  ;;  %v4226_v43 = vld [vmem:[%s5325_s7 + $0xd8] sm:$0xff]  }
 0x373   : > { %v4227_v47 = vld [vmem:[%s5325_s7 + $0x38] sm:$0xff]  }
 0x374   : > { %2007 = vmatprep.mubr.bf16.mxu0 %v1670_v1  ;;  %v4228_v62 = vld [vmem:[%s5325_s7 + $0x98] sm:$0xff]  }
 0x375   : > { %2008 = vmatmul.mubr.bf16.vlgmr.msra.gmra.mrb[56].mxu0 %v1669_v29  ;;  %v4221_v29 = vld [vmem:[%s5325_s7 + $0x70] sm:$0xff]  }
 0x376   : > { %3937 = vmatprep.mubr.msk.bf16.mxu0 %vm4322_vm0, %v4321_v31 }
 0x3d5   : > { %v3530_v33 = vpop.f32.mrb[36].mxu1 }
 0x3d6   : > { %v3531_v48 = vpop.f32.mrb[37].mxu1 }
 0x3d7   : > { %v3532_v49 = vadd.f32 %v3531_v48, %v3530_v33  ;;  %v3533_v50 = vpop.f32.mrb[38].mxu1 }
 0x3d8   : > { %v3534_v51 = vpop.f32.mrb[39].mxu1 }
 0x3d9   : > { %v3535_v52 = vadd.f32 %v3534_v51, %v3533_v50  ;;  %v1969_v57 = vadd.f32 %v3532_v49, %v3221_v53  ;;  %v4229_v49 = vld [vmem:[%s5325_s7 + $0xe0] sm:$0xff]  }
 0x3da   : > { %v4230_v50 = vld [vmem:[%s5325_s7 + $0xa0] sm:$0xff]  }
 0x3db   : > { %v1972_v61 = vadd.f32 %v3535_v52, %v3221_v53  ;;  %v4231_v52 = vld [vmem:[%s5325_s7 + $0xe8] sm:$0xff]  }
 0x448   : > { %v3552_v54 = vpop.f32.mrb[56].mxu0 }
 0x449   : > { %v3553_v55 = vpop.f32.mrb[57].mxu0 }
 0x44a   : > { %v3554_v58 = vadd.f32 %v3553_v55, %v3552_v54  ;;  %v3555_v59 = vpop.f32.mrb[58].mxu0  ;;  %v4232_v54 = vld [vmem:[%s5325_s7 + $0xa8] sm:$0xff]  }
 0x44b   : > { %v3556_v60 = vpop.f32.mrb[59].mxu0 }
 0x44c   : > { %v2010_v45 = vadd.f32 %v3554_v58, %v1969_v57  ;;  %v3557_v63 = vadd.f32 %v3556_v60, %v3555_v59  ;;  %v4234_v58 = vld [vmem:[%s5325_s7 + $0xf0] sm:$0xff]  }
 0x44e   : > { %v2013_v0 = vadd.f32 %v3557_v63, %v1972_v61  ;;  %v2016_v56 = vmax.f32 %v2010_v45, 0.0  ;;  %v4235_v63 = vld [vmem:[%s5325_s7 + $0xb0] sm:$0xff]  }
 0x450   : > { %v2017_v2 = vmax.f32 %v2013_v0, 0.0 }
 0x452   : > { %v2018_v3 = vpack.c.bf16 %v2017_v2, %v2016_v56 }
 0x454   : > { %3936 = vmatpush3.bf16.msra.mxu0 %v2018_v3  ;;  %3948 = vmatpush3.bf16.msra.mxu1 %v2018_v3 }
 0x455   : > { %3941 = vmatprep.subr.bf16.mxu0 %v4321_v31  ;;  %3959 = vmatprep.subr.bf16.mxu1 %v4321_v31 }
 0x457   : > { %3938 = vmatmul.mubr.msk.bf16.vlgmr.msra.gmra.mrb[60].mxu0 %vm2020_vm6, %v2019_v4  ;;  %3950 = vmatmul.mubr.msk.bf16.vlgmr.msra.gmra.mrb[40].mxu1 %vm2020_vm6, %v3257_v5  ;;  %v4237_v4 = vld [vmem:[%s5325_s7 + $0xf8] sm:$0xff]  }
 0x458   : > { %3942 = vmatpush3.bf16.msra.mxu0 %v2018_v3  ;;  %3960 = vmatpush3.bf16.msra.mxu1 %v2018_v3 }
 0x459   : > { %3943 = vmatprep.mubr.msk.bf16.mxu0 %vm4322_vm0, %v4321_v31  ;;  %3953 = vmatprep.subr.bf16.mxu0 %v4321_v31 }
 0x45a   : > { %3961 = vmatprep.mubr.msk.bf16.mxu1 %vm4322_vm0, %v4321_v31  ;;  %3971 = vmatprep.subr.bf16.mxu1 %v4321_v31 }
 0x45f   : > { %3944 = vmatmul.mubr.msk.bf16.vlgmr.msra.gmra.mrb[64].mxu0 %vm2020_vm6, %v3255_v6  ;;  %3962 = vmatmul.mubr.msk.bf16.vlgmr.msra.gmra.mrb[44].mxu1 %vm2020_vm6, %v3261_v7  ;;  %v4238_v7 = vld [vmem:[%s5325_s7 + $0xb8] sm:$0xff]  }
 0x460   : > { %3954 = vmatpush3.bf16.msra.mxu0 %v2018_v3  ;;  %3972 = vmatpush3.bf16.msra.mxu1 %v2018_v3 }
 0x461   : > { %3955 = vmatprep.mubr.msk.bf16.mxu0 %vm4322_vm0, %v4321_v31  ;;  %3965 = vmatprep.subr.bf16.mxu0 %v4321_v31 }
 0x462   : > { %3973 = vmatprep.mubr.msk.bf16.mxu1 %vm4322_vm0, %v4321_v31  ;;  %3983 = vmatprep.subr.bf16.mxu1 %v4321_v31 }
 0x467   : > { %3956 = vmatmul.mubr.msk.bf16.vlgmr.msra.gmra.mrb[68].mxu0 %vm2020_vm6, %v3259_v8  ;;  %3974 = vmatmul.mubr.msk.bf16.vlgmr.msra.gmra.mrb[48].mxu1 %vm2020_vm6, %v3265_v9 }
 0x468   : > { %3966 = vmatpush3.bf16.msra.mxu0 %v2018_v3  ;;  %3984 = vmatpush3.bf16.msra.mxu1 %v2018_v3 }
 0x469   : > { %3967 = vmatprep.mubr.msk.bf16.mxu0 %vm4322_vm0, %v4321_v31  ;;  %3977 = vmatprep.subr.bf16.mxu0 %v4321_v31 }
 0x46a   : > { %3985 = vmatprep.mubr.msk.bf16.mxu1 %vm4322_vm0, %v4321_v31  ;;  %3598 = vmatprep.subr.bf16.mxu1 %v4214_v18 }
 0x46f   : > { %3968 = vmatmul.mubr.msk.bf16.vlgmr.msra.gmra.mrb[72].mxu0 %vm2020_vm6, %v3263_v11  ;;  %3986 = vmatmul.mubr.msk.bf16.vlgmr.msra.gmra.mrb[52].mxu1 %vm2020_vm6, %v3269_v12 }
 0x470   : > { %3978 = vmatpush3.bf16.msra.mxu0 %v2018_v3  ;;  %3979 = vmatprep.mubr.msk.bf16.mxu0 %vm4322_vm0, %v4321_v31 }
 0x471   : > { %3576 = vmatprep.subr.bf16.mxu0 %v4205_v14  ;;  %3599 = vmatpush3.bf16.msra.mxu1 %v4216_v19 }
 0x472   : > { %3600 = vmatprep.subr.bf16.mxu1 %v4218_v32 }
 0x475   : > { %3601 = vmatpush3.bf16.msra.mxu1 %v4220_v39 }
 0x476   : > { %3602 = vmatprep.subr.bf16.mxu1 %v4222_v23 }
 0x477   : > { %3980 = vmatmul.mubr.msk.bf16.vlgmr.msra.gmra.mrb[76].mxu0 %vm2020_vm6, %v3267_v13 }
 0x478   : > { %3577 = vmatpush3.bf16.msra.mxu0 %v4206_v15 }
 0x479   : > { %3578 = vmatprep.subr.bf16.mxu0 %v4207_v10  ;;  %3603 = vmatpush3.bf16.msra.mxu1 %v4224_v20 }
 0x47a   : > { %3604 = vmatprep.subr.bf16.mxu1 %v4226_v43  ;;  %v4244_v43 = vld [vmem:[%s5327_s9 + $0x8] sm:$0xff]  }
 0x47c   : > { %3579 = vmatpush3.bf16.msra.mxu0 %v4208_v17 }
 0x47d   : > { %3580 = vmatprep.subr.bf16.mxu0 %v4209_v21  ;;  %3605 = vmatpush3.bf16.msra.mxu1 %v4228_v62  ;;  %v4248_v62 = vld [vmem:[%s5327_s9 + $0x18] sm:$0xff]  }
 0x47e   : > { %3606 = vmatprep.subr.bf16.mxu1 %v4229_v49  ;;  %v4252_v49 = vld [vmem:[%s5327_s9 + $0x28] sm:$0xff]  }
 0x480   : > { %3581 = vmatpush3.bf16.msra.mxu0 %v4210_v22 }
 0x481   : > { %3582 = vmatprep.subr.bf16.mxu0 %v4211_v16  ;;  %3607 = vmatpush3.bf16.msra.mxu1 %v4230_v50  ;;  %v4253_v50 = vld [vmem:[%s5327_s9 + $0x70] sm:$0xff]  }
 0x482   : > { %3608 = vmatprep.subr.bf16.mxu1 %v4231_v52 }
 0x484   : > { %3583 = vmatpush3.bf16.msra.mxu0 %v4212_v24 }
 0x485   : > { %3584 = vmatprep.subr.bf16.mxu0 %v4213_v25  ;;  %3609 = vmatpush3.bf16.msra.mxu1 %v4232_v54  ;;  %v4233_v25 = vld [vmem:[%s5325_s7 + $0x100] sm:$0xff]  }
 0x486   : > { %3610 = vmatprep.subr.bf16.mxu1 %v4234_v58  ;;  %v3271_v58 = vld [vmem:[%s5326_s8] ss:$0 sm:$0xff] }
 0x488   : > { %3585 = vmatpush3.bf16.msra.mxu0 %v4215_v26  ;;  %v4236_v26 = vld [vmem:[%s5325_s7 + $0x108] sm:$0xff]  }
 0x489   : > { %3586 = vmatprep.subr.bf16.mxu0 %v4217_v27  ;;  %3611 = vmatpush3.bf16.msra.mxu1 %v4235_v63  ;;  %v4239_v27 = vld [vmem:[%s5325_s7 + $0x110] sm:$0xff]  }
 0x48a   : > { %3612 = vmatprep.subr.bf16.mxu1 %v4237_v4 }
 0x48c   : > { %3587 = vmatpush3.bf16.msra.mxu0 %v4219_v28 }
 0x48d   : > { %3588 = vmatprep.subr.bf16.mxu0 %v4221_v29  ;;  %3613 = vmatpush3.bf16.msra.mxu1 %v4238_v7  ;;  %v4240_v29 = vld [vmem:[%s5325_s7 + $0x118] sm:$0xff]  }
 0x48e   : > { %v4255_v7 = vld [vmem:[%s5327_s9 + $0x78] sm:$0xff]  }
 0x490   : > { %3589 = vmatpush3.bf16.msra.mxu0 %v4223_v30 }
 0x491   : > { %3590 = vmatprep.subr.bf16.mxu0 %v4225_v42  ;;  %v4243_v42 = vld [vmem:[%s5327_s9 + $0x48] sm:$0xff]  }
 0x494   : > { %3591 = vmatpush3.bf16.msra.mxu0 %v4227_v47  ;;  %v4247_v47 = vld [vmem:[%s5327_s9 + $0x58] sm:$0xff]  }
 0x495   : > { %3989 = vmatprep.subr.bf16.mxu0 %v4321_v31 }
 0x52a   : > { %v5144_v34 = vpop.f32.mrb[60].mxu0  ;;  %v5146_v38 = vpop.f32.mrb[40].mxu1 }
 0x52b   : > { %v3939_v35 = vpop.f32.mrb[61].mxu0  ;;  %v3951_v40 = vpop.f32.mrb[41].mxu1 }
 0x52c   : > { %v2061_v36 = vpop.f32.mrb[62].mxu0  ;;  %v2151_v41 = vpop.f32.mrb[42].mxu1 }
 0x52d   : > { %v3940_v37 = vpop.f32.mrb[63].mxu0  ;;  %v3952_v44 = vpop.f32.mrb[43].mxu1  ;;  %v4241_v41 = vld [vmem:[%s5327_s9 + $0x40] sm:$0xff]  }
 0x52e   : > { %3625 = vmatprep.subr.bf16.mxu1 %v4241_v41  ;;  %v4245_v44 = vld [vmem:[%s5327_s9 + $0x50] sm:$0xff]  }
 0x532   : > { %v2103_v46 = vpop.f32.mrb[64].mxu0  ;;  %v5167_v51 = vpop.f32.mrb[44].mxu1 }
 0x533   : > { %v3945_v1 = vpop.f32.mrb[65].mxu0  ;;  %v3963_v53 = vpop.f32.mrb[45].mxu1 }
 0x534   : > { %v2106_v33 = vpop.f32.mrb[66].mxu0  ;;  %v2241_v55 = vpop.f32.mrb[46].mxu1  ;;  %v4249_v1 = vld [vmem:[%s5327_s9 + $0x60] sm:$0xff]  }
 0x535   : > { %v3946_v48 = vpop.f32.mrb[67].mxu0  ;;  %v3964_v57 = vpop.f32.mrb[47].mxu1  ;;  %v4250_v33 = vld [vmem:[%s5327_s9 + $0x20] sm:$0xff]  }
 0x536   : > { %v4251_v48 = vld [vmem:[%s5327_s9 + $0x68] sm:$0xff]  }
 0x53a   : > { %v2193_v59 = vpop.f32.mrb[68].mxu0  ;;  %v2328_v56 = vpop.f32.mrb[48].mxu1 }
 0x53b   : > { %v4106_v60 = vpack.i.bf16 %v2103_v46, %v2193_v59  ;;  %v3957_v61 = vpop.f32.mrb[69].mxu0  ;;  %v3975_v2 = vpop.f32.mrb[49].mxu1  ;;  %v4246_v46 = vld [vmem:[%s5327_s9 + $0x10] sm:$0xff]  }
 0x53c   : > { %v2196_v45 = vpop.f32.mrb[70].mxu0  ;;  %v2331_v3 = vpop.f32.mrb[50].mxu1 }
 0x53d   : > { %4107 = vrot.lane.b32.xlu0 %v4106_v60, %s4325_s14  ;;  %v3958_v0 = vpop.f32.mrb[71].mxu0  ;;  %v3976_v5 = vpop.f32.mrb[51].mxu1 }
 0x542   : > { %v2283_v6 = vpop.f32.mrb[72].mxu0  ;;  %v2418_v12 = vpop.f32.mrb[52].mxu1 }
 0x543   : > { %v3969_v8 = vpop.f32.mrb[73].mxu0  ;;  %v3987_v13 = vpop.f32.mrb[53].mxu1  ;;  %v2448_v37 = vpack.c.bf16 %v2418_v12, %v2418_v12 }
 0x544   : > { %v2286_v9 = vpop.f32.mrb[74].mxu0  ;;  %v2421_v14 = vpop.f32.mrb[54].mxu1  ;;  %v4256_v8 = vld [vmem:[%s5327_s9 + $0x38] sm:$0xff]  }
 0x545   : > { %v3970_v11 = vpop.f32.mrb[75].mxu0  ;;  %v3988_v15 = vpop.f32.mrb[55].mxu1 }
 0x54a   : > { %v2373_v10 = vpop.f32.mrb[76].mxu0 }
 0x54b   : > { %v4111_v17 = vpack.i.bf16 %v2283_v6, %v2373_v10  ;;  %v3981_v18 = vpop.f32.mrb[77].mxu0 }
 0x54c   : > { %v2376_v19 = vpop.f32.mrb[78].mxu0 }
 0x54d   : > { %4112 = vrot.lane.b32.xlu1 %v4111_v17, %s4325_s14  ;;  %v3982_v21 = vpop.f32.mrb[79].mxu0 }
 0x5af   : > { %v4108_v32 = vpop.permute.xlu0 %4107 }
 0x5b0   : > { %v4110_v39 = vunpack.i.h.bf16 %v4108_v32  ;;  %v4109_v22 = vunpack.i.l.bf16 %v4108_v32 }
 0x5b2   : > { %v2440_v23 = vsel %vm1643_vm3, %v5144_v34, %v4110_v39  ;;  %v2441_v16 = vsel %vm1643_vm3, %v5146_v38, %v4109_v22  ;;  %v2917_v22 = vld [vmem:[%s5328_s10] sm:$0x1] }
 0x5b3   : > { %v2444_v20 = vpack.c.bf16 %v2440_v23, %v2440_v23  ;;  %v2445_v24 = vpack.c.bf16 %v2441_v16, %v2441_v16 }
 0x5b5   : > { %2779 = vmatprep.mubr.bf16.mxu0 %v2445_v24 }
 0x5b6   : > { %2780 = vmatmul.mubr.bf16.vlgmr.msra.gmra.mrb[80].mxu0 %v2444_v20 }
 0x5b7   : > { %3990 = vmatpush3.bf16.msra.mxu0 %v4233_v25  ;;  %3997 = vmatprep.mubr.msk.bf16.mxu0 %vm4322_vm0, %v4321_v31 }
 0x5b8   : > { %3991 = vmatprep.subr.bf16.mxu0 %v4321_v31 }
 0x5bb   : > { %3992 = vmatpush3.bf16.msra.mxu0 %v4236_v26 }
 0x5bc   : > { %3993 = vmatprep.subr.bf16.mxu0 %v4321_v31 }
 0x5bf   : > { %v4113_v28 = vpop.permute.xlu1 %4112  ;;  %3994 = vmatpush3.bf16.msra.mxu0 %v4239_v27 }
 0x5c0   : > { %v4115_v30 = vunpack.i.h.bf16 %v4113_v28  ;;  %v4114_v34 = vunpack.i.l.bf16 %v4113_v28  ;;  %3995 = vmatprep.subr.bf16.mxu0 %v4321_v31  ;;  %v4242_v31 = vld [vmem:[%s5327_s9] sm:$0xff]  }
 0x5c2   : > { %v2442_v35 = vsel %vm1643_vm3, %v5167_v51, %v4115_v30  ;;  %v2443_v36 = vsel %vm1643_vm3, %v2328_v56, %v4114_v34  ;;  %v4254_v51 = vld [vmem:[%s5327_s9 + $0x30] sm:$0xff]  }
 0x5c3   : > { %v2446_v38 = vpack.c.bf16 %v2442_v35, %v2442_v35  ;;  %v2447_v40 = vpack.c.bf16 %v2443_v36, %v2443_v36  ;;  %3996 = vmatpush3.bf16.msra.mxu0 %v4240_v29 }
 0x5c5   : > { %2819 = vmatprep.mubr.bf16.mxu1 %v2447_v40 }
 0x5c6   : > { %2820 = vmatmul.mubr.bf16.vlgmr.msra.gmra.mrb[56].mxu1 %v2446_v38  ;;  %3998 = vmatmul.mubr.msk.bf16.vlgmr.msra.gmra.mrb[84].mxu0 %vm1643_vm3, %v2448_v37 }
 0x5c7   : > { %3626 = vmatpush3.bf16.msra.mxu1 %v4242_v31 }
 0x5c8   : > { %3627 = vmatprep.subr.bf16.mxu1 %v4243_v42 }
 0x5cb   : > { %3628 = vmatpush3.bf16.msra.mxu1 %v4244_v43 }
 0x5cc   : > { %3629 = vmatprep.subr.bf16.mxu1 %v4245_v44 }
 0x5cf   : > { %3630 = vmatpush3.bf16.msra.mxu1 %v4246_v46 }
 0x5d0   : > { %3631 = vmatprep.subr.bf16.mxu1 %v4247_v47 }
 0x5d3   : > { %3632 = vmatpush3.bf16.msra.mxu1 %v4248_v62 }
 0x5d4   : > { %3633 = vmatprep.subr.bf16.mxu1 %v4249_v1 }
 0x5d7   : > { %3634 = vmatpush3.bf16.msra.mxu1 %v4250_v33 }
 0x5d8   : > { %3635 = vmatprep.subr.bf16.mxu1 %v4251_v48 }
 0x5db   : > { %3636 = vmatpush3.bf16.msra.mxu1 %v4252_v49 }
 0x5dc   : > { %3637 = vmatprep.subr.bf16.mxu1 %v4253_v50 }
 0x5df   : > { %3638 = vmatpush3.bf16.msra.mxu1 %v4254_v51 }
 0x5e0   : > { %3639 = vmatprep.subr.bf16.mxu1 %v4255_v7 }
 0x5e3   : > { %3640 = vmatpush3.bf16.msra.mxu1 %v4256_v8 }
 0x689   : > { %v3592_v52 = vpop.f32.mrb[80].mxu0 }
 0x68a   : > { %v3593_v53 = vpop.f32.mrb[81].mxu0 }
 0x68b   : > { %v3594_v54 = vadd.f32 %v3593_v53, %v3592_v52  ;;  %v3595_v55 = vpop.f32.mrb[82].mxu0 }
 0x68c   : > { %v3596_v57 = vpop.f32.mrb[83].mxu0 }
 0x68d   : > { %v2782_v63 = vadd.f32 %v3594_v54, %v3271_v58 }
 0x699   : > { %v3614_v59 = vpop.f32.mrb[56].mxu1  ;;  %v2861_v60 = vpop.f32.mrb[84].mxu0 }
 0x69a   : > { %v3615_v61 = vpop.f32.mrb[57].mxu1  ;;  %v3999_v45 = vpop.f32.mrb[85].mxu0 }
 0x69b   : > { %v3616_v0 = vadd.f32 %v3615_v61, %v3614_v59  ;;  %v3617_v56 = vpop.f32.mrb[58].mxu1  ;;  %v2864_v2 = vpop.f32.mrb[86].mxu0 }
 0x69c   : > { %v3618_v3 = vpop.f32.mrb[59].mxu1  ;;  %v4000_v4 = vpop.f32.mrb[87].mxu0 }
 0x69d   : > { %v2822_v5 = vadd.f32 %v3616_v0, %v2782_v63 }
 0x69f   : > { %v2862_v6 = vadd.f32 %v2861_v60, %v2822_v5 }
 0x6a1   : > { %v2867_v9 = vmax.f32 %v2862_v6, 0.0 }
 0x6a3   : > { %v2871_v11 = vrot.slane %v2867_v9, 1  ;;  %v2877_v12 = vrot.slane %v2867_v9, 3  ;;  %v2875_v17 = vrot.slane %v2867_v9, 2 }
 0x6a5   : > { %v4116_v13 = vpack.i.bf16 %v2871_v11, %v2877_v12 }
 0x6a7   : > { %4117 = vrot.lane.b32.xlu0 %v4116_v13, %s4325_s14  ;;  %s3325_s14 = sshll.u32 %s4408_s21, 4  ;;  %s4326_s21 = smov [#allocation2]  }
 0x6a8   : > { %s5276_s19 = scalar_lea.hbm %s5329_s11, %s3325_s14  ;;  %s4261_s24 = sshll.u32 %s4326_s21, 4  ;;  %s4262_s24 = int_to_ptr.vmem [resolvable:$false] %s4261_s24 }
 0x6a9   : > { %s4263_s12 = scalar_lea.vmem %s4262_s24, 32  ;;  %p4264_p0 = scmp.lt.s32.totalorder %s5278_s16, %s4262_s24 }
 0x6aa   : > { %p4265_p1 = scmp.lt.s32.totalorder %s4263_s12, %s4257_s15 }
 0x6ac   : > { %p4266_p2 = por %p4265_p1, %p4264_p0 }
 0x6ae   : > { %p4267_p3 = pnand %p4266_p2, %p4260_p13 }
 0x719   : > { %v4118_v14 = vpop.permute.xlu0 %4117 }
 0x71a   : > { %v4120_v15 = vunpack.i.h.bf16 %v4118_v14  ;;  %v4119_v10 = vunpack.i.l.bf16 %v4118_v14 }
 0x71c   : > { %v2881_v18 = vsel %vm1643_vm3, %v2867_v9, %v4120_v15  ;;  %v2882_v19 = vsel %vm1643_vm3, %v2875_v17, %v4119_v10 }
 0x71d   : > { %v2883_v21 = vpack.c.bf16 %v2881_v18, %v2881_v18  ;;  %v2884_v32 = vpack.c.bf16 %v2882_v19, %v2882_v19 }
 0x71f   : > { %3046 = vmatprep.mubr.bf16.mxu1 %v2884_v32 }
 0x720   : > { %3047 = vmatmul.mubr.bf16.vlgmr.msra.gmra.mrb[60].mxu1 %v2883_v21 }
 0x7f3   : > { %v3641_v39 = vpop.f32.mrb[60].mxu1 }
 0x7f4   : > { %v3642_v23 = vpop.f32.mrb[61].mxu1 }
 0x7f5   : > { %v3643_v16 = vadd.f32 %v3642_v23, %v3641_v39  ;;  %v3644_v20 = vpop.f32.mrb[62].mxu1 }
 0x7f6   : > { %v3645_v24 = vpop.f32.mrb[63].mxu1 }
 0x7f7   : > { %v3049_v25 = vadd.f32 %v3643_v16, %v2917_v22 }
 0x7f9   : > { %3054 = vst [vmem:[%s378_s30] sm:$0x1] %v3049_v25 }
 0x7fa   : > { %4270 = shalt.err (!%p4267_p3)
}
 0x7fb   : > { %s4271_s29 = scalar_lea.hbm %s5276_s19, 16  ;;  %s4275_s30 = scalar_lea.hbm %s5329_s11, 32 }
 0x7fc   : > { %p4272_p4 = scmp.ne.s32.totalorder %s5276_s19, %s4271_s29  ;;  %p4276_p9 = scmp.lt.u32.totalorder %s5276_s19, %s5329_s11 }
 0x7fd   : > { %p4277_p10 = scmp.lt.u32.totalorder %s4275_s30, %s4271_s29  ;;  %p4279_p12 = scmp.lt.u32.totalorder %s4271_s29, %s5276_s19 }
 0x7fe   : > { %p4273_p7 = pnand %p4272_p4, %p4425_p5 }
 0x7ff   : > { %p4278_p11 = por %p4277_p10, %p4276_p9 }
 0x800   : > { %p4274_p8 = pneg %p4273_p7 }
 0x801   : > { %p4280_p13 = por %p4279_p12, %p4278_p11 }
 0x803   : > { %p4281_p0 = pnand %p4280_p13, %p4274_p8 }
 0x805   : > { %4284 = shalt.err (!%p4281_p0)
}
 0x806   : > { %4002 = dma.vmem_to_hbm [thread:$0]  (%p4425_p5), %s5278_s16, 16, %s5276_s19, %s3056_s25  }
 0x807 PF: > { %p4008_p1 = scmp.ge.s32.totalorder %s4319_s20, 2  ;;  %s3080_s15 = sand.u32 1, %s4307_s17  }
 0x808   : > { %s3081_s21 = scalar_lea.sflag [#allocation3], %s3080_s15 }
 0x809   : > { %p4005_p2 = pnand %p4008_p1, %p4429_p6 }
 0x80b   : > { %4302 = dma.done.wait (!%p4005_p2), %s3081_s21, 16  }
 0x80c   : > { %4304 = vsyncadd (!%p4005_p2), %s3081_s21, 4294967280  ;;  %s5338_s24 = sld [smem:[#allocation5_spill]]  ;;  %s5339_s19 = sld [smem:[#allocation6_spill]] }
 0x80d   : > { %p21_p3 = scmp.ge.s32.totalorder %s4412_s23, 4   ;;  %s5340_s17 = smov %s4311_s18 }
 0x80e   : > { %s5342_s20 = smov %s4412_s23 }
 0x80f   :  { %23 = sbr.rel (!%p21_p3) target bundleno = 3 (0x3), region = 122 }
 0x812   : > { %s5341_s18 = smov %s5338_s24 }
 0x816   :  { %3085 = vsyncpa [#allocation3], 1 }
 0x817   :  { %3087 = vsyncpa [#allocation3 + $0x1], 1 }

</bundles_post_ra>
